<compile_context>
chip_gen: v6e
topology: v6e:2x2x1
jax: 0.10.0
libtpu: 0.0.40
codegen_flags: <defaults>
</compile_context>

<pallas_src>
import functools

import jax
import jax.numpy as jnp
from jax.experimental import pallas as pl
from jax.experimental.pallas import tpu as pltpu

LN_EPS = 1e-5  # nn.LayerNorm default


def _round_up(v, m):
    return (v + m - 1) // m * m


def _pick_tile(n_pad, pref, min_tiles):
    """Largest lane-friendly tile <= pref that divides n_pad with >= min_tiles tiles."""
    for cand in (512, 384, 256, 128):
        if cand <= pref and n_pad % cand == 0 and n_pad // cand >= min_tiles:
            return cand
    return 128  # n_pad is always a multiple of 128


def _vmem_limit(est_bytes):
    # Headroom over the double-buffered estimate, clamped to exceed v5e's 16 MiB
    # scoped default but stay well inside v7x's 64 MiB physical VMEM.
    return int(min(max(est_bytes + (8 << 20), 32 << 20), 48 << 20))


# ---------------------------------------------------------------------------
# Graph-static preprocessing (cache this across forward calls for a static graph).
# ---------------------------------------------------------------------------
def gcn_precompute(edge_index, num_nodes, padded_nodes=None):
    """Returns (A + 2I) as int8 plus dinv = deg^-1/2 as f32 [n_pad, 1].

    PyG gcn_norm(improved=True):  A_hat = D^-1/2 (A + 2I) D^-1/2, deg = rowsum(A + 2I).
    The dinv factors are applied exactly in f32 inside the kernels, so only the
    small-integer A + 2I matrix is streamed (int8 = half the bf16 bytes, exact).
    Padded rows/cols (and padded dinv entries) are zero and contribute nothing.
    """
    # TODO(synk): the sparse edge_index -> dense adjacency scatter has no clean
    # Pallas TPU equivalent; it stays in JAX/XLA glue (graph-static, cacheable).
    src, dst = edge_index[0], edge_index[1]
    a = jnp.zeros((num_nodes, num_nodes), jnp.float32).at[dst, src].add(1.0)
    idx = jnp.arange(num_nodes)
    a = a.at[idx, idx].add(2.0)                  # improved=True self-loop weight 2
    deg = jnp.sum(a, axis=1)
    dinv = jax.lax.rsqrt(deg)
    if padded_nodes is not None and padded_nodes > num_nodes:
        pad = padded_nodes - num_nodes
        a = jnp.pad(a, ((0, pad), (0, pad)))
        dinv = jnp.pad(dinv, (0, pad))           # padded dinv = 0
    return a.astype(jnp.int8), dinv.reshape(-1, 1).astype(jnp.float32)


# ---------------------------------------------------------------------------
# Pass 1: h = dinv[src] * (LayerNorm(x) @ W^T)   (bf16 MXU operands, f32 stats)
# ---------------------------------------------------------------------------
def _ln_proj_kernel(x_ref, gamma_ref, beta_ref, w_ref, dinv_ref, h_ref):
    x = x_ref[...]                                       # [tn1, D] f32
    mean = jnp.mean(x, axis=-1, keepdims=True)
    cen = x - mean
    var = jnp.mean(cen * cen, axis=-1, keepdims=True)
    # Padded all-zero rows: cen = 0, so rsqrt(eps) is harmless (gate = beta) and
    # padded A columns / dinv entries are zero anyway -- do not "fix" this.
    gate = cen * jax.lax.rsqrt(var + LN_EPS) * gamma_ref[...] + beta_ref[...]
    # gate @ W^T with W stored as [D_out, D_in]: contract dim 1 of both operands.
    h = jax.lax.dot_general(
        gate.astype(jnp.bfloat16), w_ref[...],
        dimension_numbers=(((1,), (1,)), ((), ())),
        preferred_element_type=jnp.float32)
    h_ref[...] = (h * dinv_ref[...]).astype(h_ref.dtype)   # fold dinv[src] exactly


# ---------------------------------------------------------------------------
# Pass 2: out = tanh(dinv[dst] * ((A + 2I) @ h) + bias) * x
#   grid = (target tiles "parallel", source tiles "arbitrary");
#   accumulate directly into the resident f32 output block.
# ---------------------------------------------------------------------------
def _gate_agg_kernel(a_ref, h_ref, x_ref, bias_ref, dinv_ref, o_ref, *,
                     tk, h_resident):
    s = pl.program_id(1)

    @pl.when(s == 0)
    def _():
        o_ref[...] = jnp.zeros_like(o_ref)

    a = a_ref[...].astype(jnp.bfloat16)                  # int8 tile -> bf16 for MXU
    if h_resident:
        start = pl.multiple_of(s * tk, 128)
        h_blk = h_ref[pl.ds(start, tk), :]               # slice VMEM-resident h
    else:
        h_blk = h_ref[...]
    o_ref[...] += jnp.dot(a, h_blk, preferred_element_type=jnp.float32)

    @pl.when(s == pl.num_programs(1) - 1)
    def _():
        gcn_out = o_ref[...] * dinv_ref[...] + bias_ref[...]   # exact f32 normalization
        o_ref[...] = jnp.tanh(gcn_out) * x_ref[...]


# ---------------------------------------------------------------------------
# Wrappers
# ---------------------------------------------------------------------------
def spatial_gating_unit_from_adj(x, a_i8, dinv, gamma, beta, w, bias):
    """Hot path: assumes precomputed (padded) int8 A+2I and f32 dinv."""
    N, D = x.shape
    n_pad = a_i8.shape[0]
    assert n_pad % 128 == 0 and n_pad >= N

    x_p = x.astype(jnp.float32)
    if n_pad > N:
        x_p = jnp.pad(x_p, ((0, n_pad - N), (0, 0)))

    gamma2 = gamma.reshape(1, D).astype(jnp.float32)
    beta2 = beta.reshape(1, D).astype(jnp.float32)
    bias2 = bias.reshape(1, D).astype(jnp.float32)
    dinv2 = dinv.reshape(n_pad, 1).astype(jnp.float32)
    w_bf16 = w.astype(jnp.bfloat16)                      # [D_out, D_in], no transpose copy

    # ---- tile / residency choices --------------------------------------------
    tn1 = _pick_tile(n_pad, 512, 1)        # pass-1 row tile (amortize step overhead)
    tm = _pick_tile(n_pad, 512, 2)         # pass-2 target tile; keep >=2 tiles (v7x megacore)
    tk = _pick_tile(n_pad, 512, 1)         # pass-2 source tile
    h_bytes = n_pad * D * 2                # bf16 projected features
    h_resident = h_bytes <= (12 << 20)     # fits double-buffered even in v7x's 64 MiB VMEM

    # ---- pass 1: h = dinv * (LayerNorm(x) @ W^T) ------------------------------
    p1_est = 2 * (tn1 * D * 4 + tn1 * D * 2 + D * D * 2 + tn1 * 4 + 2 * D * 4)
    h = pl.pallas_call(
        _ln_proj_kernel,
        out_shape=jax.ShapeDtypeStruct((n_pad, D), jnp.bfloat16),
        grid_spec=pltpu.PrefetchScalarGridSpec(
            num_scalar_prefetch=0,
            grid=(n_pad // tn1,),
            in_specs=[
                pl.BlockSpec((tn1, D), lambda i: (i, 0)),   # x tile
                pl.BlockSpec((1, D), lambda i: (0, 0)),     # gamma
                pl.BlockSpec((1, D), lambda i: (0, 0)),     # beta
                pl.BlockSpec((D, D), lambda i: (0, 0)),     # W [out, in] (resident)
                pl.BlockSpec((tn1, 1), lambda i: (i, 0)),   # dinv[src] column
            ],
            out_specs=pl.BlockSpec((tn1, D), lambda i: (i, 0)),
        ),
        compiler_params=pltpu.CompilerParams(
            dimension_semantics=("parallel",),
            vmem_limit_bytes=_vmem_limit(p1_est)),
    )(x_p, gamma2, beta2, w_bf16, dinv2)

    # ---- pass 2: out = tanh(dinv_t * ((A+2I) @ h) + bias) * x -----------------
    if h_resident:
        # DMA'd once and kept resident -> no per-target-tile re-read of h.
        h_spec = pl.BlockSpec((n_pad, D), lambda i, s: (0, 0))
    else:
        h_spec = pl.BlockSpec((tk, D), lambda i, s: (s, 0))

    # TODO(synk): for large sparse graphs, add block-sparse skipping of all-zero
    # A tiles via scalar-prefetched per-target-row nonzero-block lists + pl.when.
    p2_est = 2 * (tm * tk                                   # int8 A tile
                  + (n_pad if h_resident else tk) * D * 2   # h
                  + 2 * tm * D * 4                          # x tile + output block
                  + tm * 4 + 2 * D * 4)                     # dinv/bias
    out_p = pl.pallas_call(
        functools.partial(_gate_agg_kernel, tk=tk, h_resident=h_resident),
        out_shape=jax.ShapeDtypeStruct((n_pad, D), jnp.float32),
        grid_spec=pltpu.PrefetchScalarGridSpec(
            num_scalar_prefetch=0,
            grid=(n_pad // tm, n_pad // tk),                 # (targets, sources)
            in_specs=[
                pl.BlockSpec((tm, tk), lambda i, s: (i, s)),  # A+2I tile (int8)
                h_spec,                                        # h (bf16)
                pl.BlockSpec((tm, D), lambda i, s: (i, 0)),   # x target tile (fetched once/i)
                pl.BlockSpec((1, D), lambda i, s: (0, 0)),    # bias
                pl.BlockSpec((tm, 1), lambda i, s: (i, 0)),   # dinv[dst] column
            ],
            out_specs=pl.BlockSpec((tm, D), lambda i, s: (i, 0)),
        ),
        compiler_params=pltpu.CompilerParams(
            dimension_semantics=("parallel", "arbitrary"),
            vmem_limit_bytes=_vmem_limit(p2_est)),
    )(a_i8, h, x_p, bias2, dinv2)

    return out_p[:N].astype(x.dtype)


def spatial_gating_unit(x, edge_index, gamma, beta, w, bias):
    """Matches SpatialGatingUnit.forward(x, edge_index).

    For a static graph, call `gcn_precompute(...)` once, cache its outputs, and
    call `spatial_gating_unit_from_adj` directly to skip the per-call scatter.
    """
    N = x.shape[0]
    n_pad = _round_up(N, 128)
    a_i8, dinv = gcn_precompute(edge_index, N, padded_nodes=n_pad)
    return spatial_gating_unit_from_adj(x, a_i8, dinv, gamma, beta, w, bias)


# ---------------------------------------------------------------------------
# Demo
# ---------------------------------------------------------------------------
if __name__ == "__main__":
    N = 256        # graph nodes -> two 128-row target tiles (parallel grid axis)
    FFN_DIM = 128  # ffn_dim    -> lane-dense feature axis

    key = jax.random.PRNGKey(0)
    kx, kw = jax.random.split(key)

    x = jax.random.normal(kx, (N, FFN_DIM), dtype=jnp.float32)

    # Deterministic bidirectional ring graph with +7 chords, as [2, E] edge list.
    src = jnp.arange(N, dtype=jnp.int32)
    dst1 = (src + 1) % N
    dst7 = (src + 7) % N
    edge_index = jnp.stack(
        [jnp.concatenate([src, dst1, src, dst7]),
         jnp.concatenate([dst1, src, dst7, src])], axis=0)   # [2, 4N]

    # Parameters per SpatialGatingUnit.reset_parameters():
    #   LayerNorm: weight=1, bias=0
    #   gcn.lin.weight ~ U(-init_eps, init_eps), init_eps = 0.001 / ffn_dim
    #   gcn.bias = 1.0
    init_eps = 0.001 / FFN_DIM
    gamma = jnp.ones((FFN_DIM,), jnp.float32)
    beta = jnp.zeros((FFN_DIM,), jnp.float32)
    w = jax.random.uniform(kw, (FFN_DIM, FFN_DIM), jnp.float32,
                           minval=-init_eps, maxval=init_eps)   # [out, in]
    bias = jnp.ones((FFN_DIM,), jnp.float32)

    out = jax.jit(spatial_gating_unit)(x, edge_index, gamma, beta, w, bias)
    out = jax.block_until_ready(out)
    assert out.shape == (N, FFN_DIM) and out.dtype == jnp.float32

    # Pure-JAX f32 reference (kernel quantization is limited to bf16 LN-out/W/h).
    def reference(x, edge_index, gamma, beta, w, bias):
        mean = jnp.mean(x, axis=-1, keepdims=True)
        var = jnp.mean((x - mean) ** 2, axis=-1, keepdims=True)
        gate = (x - mean) * jax.lax.rsqrt(var + LN_EPS) * gamma + beta
        h = gate @ w.T
        n = x.shape[0]
        a = jnp.zeros((n, n), jnp.float32).at[edge_index[1], edge_index[0]].add(1.0)
        a = a + 2.0 * jnp.eye(n, dtype=jnp.float32)
        deg = jnp.sum(a, axis=1)
        dinv = jax.lax.rsqrt(deg)
        a_hat = dinv[:, None] * a * dinv[None, :]
        return jnp.tanh(a_hat @ h + bias) * x

    ref = reference(x, edge_index, gamma, beta, w, bias)
    max_err = float(jnp.max(jnp.abs(out - ref)))
    assert max_err < 5e-3, f"max abs error too large: {max_err}"
    print("KERNEL_OK")
</pallas_src>

<mosaic_0001>
module attributes {stable_mosaic.version = 11 : i64} {
  func.func private @main(%arg0: i32) attributes {dimension_semantics = [#tpu.dimension_semantics<core_parallel>], iteration_bounds = array<i64: 2>, tpu.core_type = #tpu.core_type<sc_scalar_subcore>, window_params = []} {
    return
  }
}

module attributes {stable_mosaic.version = 11 : i64} {
  func.func private @main(%arg0: i32) attributes {dimension_semantics = [#tpu.dimension_semantics<core_parallel>], iteration_bounds = array<i64: 2>, tpu.core_type = #tpu.core_type<sc_scalar_subcore>, window_params = []} {
    return
  }
}

module attributes {stable_mosaic.version = 11 : i64} {
  func.func @_gate_agg_kernel(%arg0: i32, %arg1: i32, %arg2: memref<128x256xi8, #tpu.memory_space<vmem>>, %arg3: memref<256x128xbf16, #tpu.memory_space<vmem>>, %arg4: memref<128x128xf32, #tpu.memory_space<vmem>>, %arg5: memref<1x128xf32, #tpu.memory_space<vmem>>, %arg6: memref<128x1xf32, #tpu.memory_space<vmem>>, %arg7: memref<128x128xf32, #tpu.memory_space<vmem>>) attributes {dimension_semantics = [#tpu.dimension_semantics<parallel>, #tpu.dimension_semantics<arbitrary>], iteration_bounds = array<i64: 2, 1>, scalar_prefetch = 0 : i64, scratch_operands = 0 : i64, tpu.core_type = #tpu.core_type<tc>, window_params = [{transform_indices = @transform_0, window_bounds = array<i64: 128, 256>}, {pipeline_mode = #tpu.pipeline_mode<synchronous>, transform_indices = @transform_1, window_bounds = array<i64: 256, 128>}, {transform_indices = @transform_2, window_bounds = array<i64: 128, 128>}, {pipeline_mode = #tpu.pipeline_mode<synchronous>, transform_indices = @transform_3, window_bounds = array<i64: 1, 128>}, {transform_indices = @transform_4, window_bounds = array<i64: 128, 1>}, {transform_indices = @transform_5, window_bounds = array<i64: 128, 128>}]} {
    %c0_i32 = arith.constant 0 : i32
    %0 = arith.cmpi eq, %arg1, %c0_i32 : i32
    %1 = arith.extui %0 : i1 to i32
    %c0_i32_0 = arith.constant 0 : i32
    %2 = arith.cmpi ne, %1, %c0_i32_0 : i32
    scf.if %2 {
      %cst_9 = arith.constant 0.000000e+00 : f32
      %16 = vector.broadcast %cst_9 : f32 to vector<128x128xf32>
      %c0_10 = arith.constant 0 : index
      %c0_11 = arith.constant 0 : index
      %17 = vector.load %arg7[%c0_10, %c0_11] : memref<128x128xf32, #tpu.memory_space<vmem>>, vector<128x128xf32>
      tpu.vector_store %arg7[%c0_10, %c0_11], %16 {strides = array<i32>} : memref<128x128xf32, #tpu.memory_space<vmem>>, vector<128x128xf32>,
    } else {
    }
    %c0 = arith.constant 0 : index
    %c0_1 = arith.constant 0 : index
    %3 = vector.load %arg2[%c0, %c0_1] : memref<128x256xi8, #tpu.memory_space<vmem>>, vector<128x256xi8>
    %4 = arith.sitofp %3 : vector<128x256xi8> to vector<128x256xbf16>
    %c256_i32 = arith.constant 256 : i32
    %5 = arith.muli %arg1, %c256_i32 : i32
    %6 = tpu.assume_multiple %5, 128 : i32
    %7 = arith.index_cast %6 : i32 to index
    %c0_2 = arith.constant 0 : index
    %8 = vector.load %arg3[%7, %c0_2] : memref<256x128xbf16, #tpu.memory_space<vmem>>, vector<256x128xbf16>
    %c0_3 = arith.constant 0 : index
    %c0_4 = arith.constant 0 : index
    %9 = vector.load %arg7[%c0_3, %c0_4] : memref<128x128xf32, #tpu.memory_space<vmem>>, vector<128x128xf32>
    %cst = arith.constant dense<0.000000e+00> : vector<128x128xf32>
    %10 = tpu.matmul %4, %8, %cst {dimension_numbers = #tpu.dot_dimension_numbers<[1], [0], [0], [1], [0, 0, 1, 1], [], []>} : vector<128x256xbf16>, vector<256x128xbf16>, vector<128x128xf32> -> vector<128x128xf32>
    %11 = arith.addf %9, %10 : vector<128x128xf32>
    %c0_5 = arith.constant 0 : index
    %c0_6 = arith.constant 0 : index
    %12 = vector.load %arg7[%c0_5, %c0_6] : memref<128x128xf32, #tpu.memory_space<vmem>>, vector<128x128xf32>
    tpu.vector_store %arg7[%c0_5, %c0_6], %11 {strides = array<i32>} : memref<128x128xf32, #tpu.memory_space<vmem>>, vector<128x128xf32>,
    %c0_i32_7 = arith.constant 0 : i32
    %13 = arith.cmpi eq, %arg1, %c0_i32_7 : i32
    %14 = arith.extui %13 : i1 to i32
    %c0_i32_8 = arith.constant 0 : i32
    %15 = arith.cmpi ne, %14, %c0_i32_8 : i32
    scf.if %15 {
      %c0_9 = arith.constant 0 : index
      %c0_10 = arith.constant 0 : index
      %16 = vector.load %arg7[%c0_9, %c0_10] : memref<128x128xf32, #tpu.memory_space<vmem>>, vector<128x128xf32>
      %c0_11 = arith.constant 0 : index
      %c0_12 = arith.constant 0 : index
      %17 = vector.load %arg6[%c0_11, %c0_12] : memref<128x1xf32, #tpu.memory_space<vmem>>, vector<128x1xf32>
      %18 = vector.broadcast %17 : vector<128x1xf32> to vector<128x128xf32>
      %19 = arith.mulf %16, %18 : vector<128x128xf32>
      %c0_13 = arith.constant 0 : index
      %c0_14 = arith.constant 0 : index
      %20 = vector.load %arg5[%c0_13, %c0_14] : memref<1x128xf32, #tpu.memory_space<vmem>>, vector<1x128xf32>
      %21 = vector.broadcast %20 : vector<1x128xf32> to vector<128x128xf32>
      %22 = arith.addf %19, %21 : vector<128x128xf32>
      %23 = math.tanh %22 : vector<128x128xf32>
      %c0_15 = arith.constant 0 : index
      %c0_16 = arith.constant 0 : index
      %24 = vector.load %arg4[%c0_15, %c0_16] : memref<128x128xf32, #tpu.memory_space<vmem>>, vector<128x128xf32>
      %25 = arith.mulf %23, %24 : vector<128x128xf32>
      %c0_17 = arith.constant 0 : index
      %c0_18 = arith.constant 0 : index
      %26 = vector.load %arg7[%c0_17, %c0_18] : memref<128x128xf32, #tpu.memory_space<vmem>>, vector<128x128xf32>
      tpu.vector_store %arg7[%c0_17, %c0_18], %25 {strides = array<i32>} : memref<128x128xf32, #tpu.memory_space<vmem>>, vector<128x128xf32>,
    } else {
    }
    return
  }
  func.func @transform_0(%arg0: i32, %arg1: i32) -> (i32, i32) {
    %c0_i32 = arith.constant 0 : i32
    return %arg0, %arg1 : i32, i32
  }
  func.func @transform_1(%arg0: i32, %arg1: i32) -> (i32, i32) {
    %c0_i32 = arith.constant 0 : i32
    %c0_i32_0 = arith.constant 0 : i32
    %c0_i32_1 = arith.constant 0 : i32
    return %c0_i32, %c0_i32_0 : i32, i32
  }
  func.func @transform_2(%arg0: i32, %arg1: i32) -> (i32, i32) {
    %c0_i32 = arith.constant 0 : i32
    %c0_i32_0 = arith.constant 0 : i32
    return %arg0, %c0_i32 : i32, i32
  }
  func.func @transform_3(%arg0: i32, %arg1: i32) -> (i32, i32) {
    %c0_i32 = arith.constant 0 : i32
    %c0_i32_0 = arith.constant 0 : i32
    %c0_i32_1 = arith.constant 0 : i32
    return %c0_i32, %c0_i32_0 : i32, i32
  }
  func.func @transform_4(%arg0: i32, %arg1: i32) -> (i32, i32) {
    %c0_i32 = arith.constant 0 : i32
    %c0_i32_0 = arith.constant 0 : i32
    return %arg0, %c0_i32 : i32, i32
  }
  func.func @transform_5(%arg0: i32, %arg1: i32) -> (i32, i32) {
    %c0_i32 = arith.constant 0 : i32
    %c0_i32_0 = arith.constant 0 : i32
    return %arg0, %c0_i32 : i32, i32
  }
}

module attributes {stable_mosaic.version = 11 : i64} {
  func.func @_ln_proj_kernel(%arg0: i32, %arg1: memref<256x128xf32, #tpu.memory_space<vmem>>, %arg2: memref<1x128xf32, #tpu.memory_space<vmem>>, %arg3: memref<1x128xf32, #tpu.memory_space<vmem>>, %arg4: memref<128x128xbf16, #tpu.memory_space<vmem>>, %arg5: memref<256x1xf32, #tpu.memory_space<vmem>>, %arg6: memref<256x128xbf16, #tpu.memory_space<vmem>>) attributes {dimension_semantics = [#tpu.dimension_semantics<parallel>], iteration_bounds = array<i64: 1>, scalar_prefetch = 0 : i64, scratch_operands = 0 : i64, tpu.core_type = #tpu.core_type<tc>, window_params = [{transform_indices = @transform_0, window_bounds = array<i64: 256, 128>}, {pipeline_mode = #tpu.pipeline_mode<synchronous>, transform_indices = @transform_1, window_bounds = array<i64: 1, 128>}, {pipeline_mode = #tpu.pipeline_mode<synchronous>, transform_indices = @transform_2, window_bounds = array<i64: 1, 128>}, {pipeline_mode = #tpu.pipeline_mode<synchronous>, transform_indices = @transform_3, window_bounds = array<i64: 128, 128>}, {transform_indices = @transform_4, window_bounds = array<i64: 256, 1>}, {transform_indices = @transform_5, window_bounds = array<i64: 256, 128>}]} {
    %c0 = arith.constant 0 : index
    %c0_0 = arith.constant 0 : index
    %0 = vector.load %arg1[%c0, %c0_0] : memref<256x128xf32, #tpu.memory_space<vmem>>, vector<256x128xf32>
    %cst = arith.constant dense<0.000000e+00> : vector<256xf32>
    %1 = vector.multi_reduction <add>, %0, %cst [1] : vector<256x128xf32> to vector<256xf32>
    %2 = vector.shape_cast %1 : vector<256xf32> to vector<256x1xf32>
    %cst_1 = arith.constant 1.280000e+02 : f32
    %3 = vector.broadcast %cst_1 : f32 to vector<256x1xf32>
    %4 = arith.divf %2, %3 : vector<256x1xf32>
    %5 = vector.broadcast %4 : vector<256x1xf32> to vector<256x128xf32>
    %6 = arith.subf %0, %5 : vector<256x128xf32>
    %7 = arith.mulf %6, %6 : vector<256x128xf32>
    %cst_2 = arith.constant dense<0.000000e+00> : vector<256xf32>
    %8 = vector.multi_reduction <add>, %7, %cst_2 [1] : vector<256x128xf32> to vector<256xf32>
    %9 = vector.shape_cast %8 : vector<256xf32> to vector<256x1xf32>
    %cst_3 = arith.constant 1.280000e+02 : f32
    %10 = vector.broadcast %cst_3 : f32 to vector<256x1xf32>
    %11 = arith.divf %9, %10 : vector<256x1xf32>
    %cst_4 = arith.constant 9.99999974E-6 : f32
    %12 = vector.broadcast %cst_4 : f32 to vector<256x1xf32>
    %13 = arith.addf %11, %12 : vector<256x1xf32>
    %14 = math.rsqrt %13 : vector<256x1xf32>
    %15 = vector.broadcast %14 : vector<256x1xf32> to vector<256x128xf32>
    %16 = arith.mulf %6, %15 : vector<256x128xf32>
    %c0_5 = arith.constant 0 : index
    %c0_6 = arith.constant 0 : index
    %17 = vector.load %arg2[%c0_5, %c0_6] : memref<1x128xf32, #tpu.memory_space<vmem>>, vector<1x128xf32>
    %18 = vector.broadcast %17 : vector<1x128xf32> to vector<256x128xf32>
    %19 = arith.mulf %16, %18 : vector<256x128xf32>
    %c0_7 = arith.constant 0 : index
    %c0_8 = arith.constant 0 : index
    %20 = vector.load %arg3[%c0_7, %c0_8] : memref<1x128xf32, #tpu.memory_space<vmem>>, vector<1x128xf32>
    %21 = vector.broadcast %20 : vector<1x128xf32> to vector<256x128xf32>
    %22 = arith.addf %19, %21 : vector<256x128xf32>
    %23 = arith.truncf %22 : vector<256x128xf32> to vector<256x128xbf16>
    %c0_9 = arith.constant 0 : index
    %c0_10 = arith.constant 0 : index
    %24 = vector.load %arg4[%c0_9, %c0_10] : memref<128x128xbf16, #tpu.memory_space<vmem>>, vector<128x128xbf16>
    %cst_11 = arith.constant dense<0.000000e+00> : vector<256x128xf32>
    %25 = tpu.matmul %23, %24, %cst_11 {dimension_numbers = #tpu.dot_dimension_numbers<[1], [1], [0], [0], [0, 0, 1, 0], [], []>} : vector<256x128xbf16>, vector<128x128xbf16>, vector<256x128xf32> -> vector<256x128xf32>
    %c0_12 = arith.constant 0 : index
    %c0_13 = arith.constant 0 : index
    %26 = vector.load %arg5[%c0_12, %c0_13] : memref<256x1xf32, #tpu.memory_space<vmem>>, vector<256x1xf32>
    %27 = vector.broadcast %26 : vector<256x1xf32> to vector<256x128xf32>
    %28 = arith.mulf %25, %27 : vector<256x128xf32>
    %29 = arith.truncf %28 : vector<256x128xf32> to vector<256x128xbf16>
    %c0_14 = arith.constant 0 : index
    %c0_15 = arith.constant 0 : index
    %30 = vector.load %arg6[%c0_14, %c0_15] : memref<256x128xbf16, #tpu.memory_space<vmem>>, vector<256x128xbf16>
    tpu.vector_store %arg6[%c0_14, %c0_15], %29 {strides = array<i32>} : memref<256x128xbf16, #tpu.memory_space<vmem>>, vector<256x128xbf16>,
    return
  }
  func.func @transform_0(%arg0: i32) -> (i32, i32) {
    %c0_i32 = arith.constant 0 : i32
    %c0_i32_0 = arith.constant 0 : i32
    return %arg0, %c0_i32 : i32, i32
  }
  func.func @transform_1(%arg0: i32) -> (i32, i32) {
    %c0_i32 = arith.constant 0 : i32
    %c0_i32_0 = arith.constant 0 : i32
    %c0_i32_1 = arith.constant 0 : i32
    return %c0_i32, %c0_i32_0 : i32, i32
  }
  func.func @transform_2(%arg0: i32) -> (i32, i32) {
    %c0_i32 = arith.constant 0 : i32
    %c0_i32_0 = arith.constant 0 : i32
    %c0_i32_1 = arith.constant 0 : i32
    return %c0_i32, %c0_i32_0 : i32, i32
  }
  func.func @transform_3(%arg0: i32) -> (i32, i32) {
    %c0_i32 = arith.constant 0 : i32
    %c0_i32_0 = arith.constant 0 : i32
    %c0_i32_1 = arith.constant 0 : i32
    return %c0_i32, %c0_i32_0 : i32, i32
  }
  func.func @transform_4(%arg0: i32) -> (i32, i32) {
    %c0_i32 = arith.constant 0 : i32
    %c0_i32_0 = arith.constant 0 : i32
    return %arg0, %c0_i32 : i32, i32
  }
  func.func @transform_5(%arg0: i32) -> (i32, i32) {
    %c0_i32 = arith.constant 0 : i32
    %c0_i32_0 = arith.constant 0 : i32
    return %arg0, %c0_i32 : i32, i32
  }
}

</mosaic_0001>

<bundles_post_ra>
// kernel: spatial_gating_unit.3
= control target key start
LH: loop header
LB: loop body
LE: loop exit
PB: predicated region body
PF: predicated region fallthrough
CT: control target
= control target key end

     0   :  { %10 = vsyncpa [#allocation3], 0  ;;  %s1573_s0 = inlined_call_operand.vmem [shape: s8[256,256], index: 0, kind: input, shape index: {}]   ;;  %s1574_s1 = inlined_call_operand.vmem [shape: bf16[256,128], index: 1, kind: input, shape index: {}]   ;;  %s1575_s2 = inlined_call_operand.vmem [shape: f32[256,128], index: 2, kind: input, shape index: {}]   ;;  %s1576_s3 = inlined_call_operand.vmem [shape: f32[1,128], index: 3, kind: input, shape index: {}]   ;;  %s1577_s4 = inlined_call_operand.vmem [shape: f32[256,1], index: 4, kind: input, shape index: {}]   ;;  %s1578_s5 = inlined_call_operand.hbm [shape: f32[256,128], index: 5, kind: output, shape index: {}]  }
   0x1   :  { %12 = vsyncpa [#allocation3 + $0x1], 0  ;;  %s1296_s18 = smov 0   ;;  %s1298_s19 = smov 0  }
   0x2   :  { %s1300_s20 = smov 0   ;;  %s1302_s21 = smov 0  }
   0x3   :  { %s1304_s22 = smov 0   ;;  %s1306_s23 = smov 0  }
   0x4 LB: > { %s958_s24 = sadd.s32 4294967295, %s1260_s23   ;;  %s959_s25 = sadd.s32 4294967294, %s1260_s23   ;;  %s1260_s23 = sphi %s1306_s23, %s18_s23   ;;  %s1256_s22 = sphi %s1304_s22, %s1585_s22   ;;  %s1252_s21 = sphi %s1302_s21, %s1584_s21   ;;  %s1248_s20 = sphi %s1300_s20, %s1583_s20   ;;  %s1244_s19 = sphi %s1298_s19, %s1582_s19   ;;  %s1240_s18 = sphi %s1296_s18, %s1581_s18  }
   0x5   : > { %s30_s26 = sadd.s32 1, %s1256_s22  ;;  %s159_s27 = sadd.s32 1, %s1248_s20 }
   0x6   : > { %p32_p0 = scmp.ge.s32.totalorder %s30_s26, 2  ;;  %p169_p1 = scmp.ne.s32.totalorder %s1248_s20, %s1244_s19 }
   0x7   : > { %p170_p2 = scmp.eq.s32.totalorder %s958_s24, 1  ;;  %p175_p3 = scmp.ne.s32.totalorder %s1244_s19, %s1240_s18 }
   0x8   : > { %s1587_s26 = smov (%p32_p0, %s30_s26), 0  ;;  %p176_p5 = scmp.eq.s32.totalorder %s959_s25, 1 }
   0x9   : > { %p1336_p4 = por %p170_p2, %p169_p1  ;;  %s156_s29 = ssub.s32 %s1256_s22, %s1587_s26 }
   0xa   : > { %p962_p6 = scmp.ge.s32.totalorder %s1260_s23, 1  ;;  %p157_p7 = scmp.eq.s32.totalorder %s156_s29, 0 }
   0xb   : > { %p1343_p8 = por %p176_p5, %p175_p3  ;;  %p233_p9 = scmp.lt.s32.totalorder %s1260_s23, 3 }
   0xc   : > { %s1349_s6 = scalar_select %p157_p7, %s1248_s20, %s159_s27  }
   0xd   : > { %p234_p10 = pnand %p962_p6, %p233_p9 }
   0xe   : > { %s964_s9 = sshll.u32 (!%p234_p10), %s1252_s21, 2  ;;  %s967_s24 = sshll.u32 (!%p234_p10), %s1252_s21, 4 }
   0xf   : > { %237 = sbr.rel (%p234_p10) target bundleno = 313 (0x139), region = 40  ;;  %p278_p11 = scmp.lt.s32.totalorder (!%p234_p10), %s964_s9, 7 }
  0x10   : > { %p289_p12 = scmp.lt.s32.totalorder (!%p234_p10), %s967_s24, 31  ;;  %s1263_s7 = smov (!%p234_p10), [#allocation2]  }
  0x14   : > { %v1136_v0 = vld [vmem:[%s1574_s1 + $0x78] sm:$0xff]   ;;  %v1138_v2 = vld [vmem:[%s1574_s1 + $0x70] sm:$0xff]   ;;  %v1140_v4 = vld [vmem:[%s1574_s1 + $0x68] sm:$0xff]   ;;  %s1589_s9 = smov (!%p278_p11, %s964_s9), 7  ;;  %v1262_v5 = vmov 0   ;;  %s1591_s24 = smov (!%p289_p12, %s967_s24), 31 }
  0x15   : > { %v1137_v1 = vld [vmem:[%s1574_s1 + $0x38] sm:$0xff]   ;;  %995 = vmatprep.subr.bf16.mxu0 %v1136_v0  ;;  %1059 = vmatprep.subr.bf16.mxu1 %v1136_v0  ;;  %v1139_v3 = vld [vmem:[%s1574_s1 + $0x30] sm:$0xff]   ;;  %v1141_v6 = vld [vmem:[%s1574_s1 + $0x28] sm:$0xff]   ;;  %s993_s8 = sshll.u32 %s1589_s9, 4  ;;  %s968_s9 = sshll.u32 %s1591_s24, 3 }
  0x16   : > { %996 = vmatpush3.bf16.msra.mxu0 %v1137_v1  ;;  %1067 = vmatpush3.bf16.msra.mxu1 %v1137_v1  ;;  %v1142_v7 = vld [vmem:[%s1574_s1 + $0x60] sm:$0xff]   ;;  %v1144_v9 = vld [vmem:[%s1574_s1 + $0x58] sm:$0xff]   ;;  %s1385_s16 = scalar_lea.vmem %s1573_s0, %s993_s8  ;;  %v1146_v11 = vld [vmem:[%s1574_s1 + $0x50] sm:$0xff]   ;;  %s1401_s10 = scalar_lea.vmem %s1577_s4, %s968_s9 }
  0x17   : > { %997 = vmatprep.subr.bf16.mxu0 %v1138_v2  ;;  %1060 = vmatprep.subr.bf16.mxu1 %v1138_v2  ;;  %v1143_v8 = vld [vmem:[%s1574_s1 + $0x20] sm:$0xff]   ;;  %v1145_v10 = vld [vmem:[%s1574_s1 + $0x18] sm:$0xff]   ;;  %v323_v12 = vld [vmem:[%s1385_s16 + $0x8] sm:$0xff]  ;;  %s1465_s13 = scalar_lea.vmem %s1575_s2, %s968_s9  ;;  %s994_s9 = sshll.u32 %s1252_s21, 11 }
  0x18   : > { %1135 = vset.pattern.permute.xlu1 %v1262_v5  ;;  %1134 = vset.pattern.permute.xlu0 %v1262_v5  ;;  %v327_v13 = vld [vmem:[%s1385_s16 + $0x28] sm:$0xff]  ;;  %v331_v14 = vunpack.c.l.s8.bf16 %v323_v12  ;;  %v1147_v16 = vld [vmem:[%s1574_s1 + $0x10] sm:$0xff]   ;;  %v643_v18 = vld [vmem:[%s1401_s10] sm:$0xff]  ;;  %v333_v31 = vunpack.c.h.s8.bf16 %v323_v12  ;;  %s1520_s27 = scalar_lea.hbm %s1578_s5, %s994_s9 }
  0x19   : > { %v339_v15 = vunpack.c.l.s8.bf16 %v327_v13  ;;  %v645_v17 = vld [vmem:[%s1401_s10 + $0x10] sm:$0xff]  ;;  %v1148_v19 = vld [vmem:[%s1574_s1 + $0x48] sm:$0xff]   ;;  %661 = vperm.xlu0 %1134, %v643_v18   ;;  %v646_v21 = vld [vmem:[%s1401_s10 + $0x18] sm:$0xff]  ;;  %v341_v32 = vunpack.c.h.s8.bf16 %v327_v13 }
  0x1a   : > { %998 = vmatpush3.bf16.msra.mxu0 %v1139_v3  ;;  %1068 = vmatpush3.bf16.msra.mxu1 %v1139_v3  ;;  %v1149_v20 = vld [vmem:[%s1574_s1 + $0x8] sm:$0xff]   ;;  %v1150_v23 = vld [vmem:[%s1574_s1 + $0x40] sm:$0xff]   ;;  %v650_v33 = vld [vmem:[%s1401_s10 + $0x38] sm:$0xff] }
  0x1b   : > { %999 = vmatprep.subr.bf16.mxu0 %v1140_v4  ;;  %1061 = vmatprep.subr.bf16.mxu1 %v1140_v4  ;;  %v644_v22 = vld [vmem:[%s1401_s10 + $0x8] sm:$0xff]  ;;  %v1151_v24 = vld [vmem:[%s1574_s1] sm:$0xff]   ;;  %v649_v34 = vld [vmem:[%s1401_s10 + $0x30] sm:$0xff] }
  0x1c   : > { %527 = vmatprep.mubr.bf16.mxu0 %v331_v14  ;;  %559 = vmatprep.mubr.bf16.mxu1 %v339_v15  ;;  %v322_v25 = vld [vmem:[%s1385_s16] sm:$0xff]  ;;  %v648_v27 = vld [vmem:[%s1401_s10 + $0x28] sm:$0xff]  ;;  %v325_v35 = vld [vmem:[%s1385_s16 + $0x18] sm:$0xff] }
  0x1d   : > { %671 = vperm.xlu1 %1135, %v645_v17   ;;  %666 = vperm.xlu0 %1134, %v644_v22   ;;  %v326_v26 = vld [vmem:[%s1385_s16 + $0x20] sm:$0xff]  ;;  %v330_v29 = vunpack.c.l.s8.bf16 %v322_v25  ;;  %v329_v36 = vld [vmem:[%s1385_s16 + $0x38] sm:$0xff]  ;;  %v652_v37 = vld [vmem:[%s1401_s10 + $0x48] sm:$0xff]  ;;  %v332_v39 = vunpack.c.h.s8.bf16 %v322_v25  ;;  %v335_v41 = vunpack.c.l.s8.bf16 %v325_v35  ;;  %v337_v51 = vunpack.c.h.s8.bf16 %v325_v35 }
  0x1e   : > { %1000 = vmatpush3.bf16.msra.mxu0 %v1141_v6  ;;  %1069 = vmatpush3.bf16.msra.mxu1 %v1141_v6  ;;  %v647_v28 = vld [vmem:[%s1401_s10 + $0x20] sm:$0xff]  ;;  %v338_v30 = vunpack.c.l.s8.bf16 %v326_v26  ;;  %v340_v40 = vunpack.c.h.s8.bf16 %v326_v26  ;;  %v343_v42 = vunpack.c.l.s8.bf16 %v329_v36  ;;  %v654_v43 = vld [vmem:[%s1401_s10 + $0x58] sm:$0xff]  ;;  %v653_v44 = vld [vmem:[%s1401_s10 + $0x50] sm:$0xff]  ;;  %v345_v52 = vunpack.c.h.s8.bf16 %v329_v36 }
  0x1f   : > { %1001 = vmatprep.subr.bf16.mxu0 %v1142_v7  ;;  %1062 = vmatprep.subr.bf16.mxu1 %v1142_v7  ;;  %v651_v38 = vld [vmem:[%s1401_s10 + $0x40] sm:$0xff]  ;;  %v324_v45 = vld [vmem:[%s1385_s16 + $0x10] sm:$0xff]  ;;  %v656_v47 = vld [vmem:[%s1401_s10 + $0x68] sm:$0xff] }
  0x20   : > { %v328_v46 = vld [vmem:[%s1385_s16 + $0x30] sm:$0xff]  ;;  %v655_v48 = vld [vmem:[%s1401_s10 + $0x60] sm:$0xff]  ;;  %v334_v49 = vunpack.c.l.s8.bf16 %v324_v45  ;;  %v658_v53 = vld [vmem:[%s1401_s10 + $0x78] sm:$0xff]  ;;  %v336_v55 = vunpack.c.h.s8.bf16 %v324_v45  ;;  %s1188_s16 = sshll.u32 %s1263_s7, 4  ;;  %s1189_s16 = int_to_ptr.vmem [resolvable:$false] %s1188_s16 }
  0x21   : > { %676 = vperm.xlu1 %1135, %v646_v21   ;;  %681 = vperm.xlu0 %1134, %v647_v28   ;;  %v342_v50 = vunpack.c.l.s8.bf16 %v328_v46  ;;  %v657_v54 = vld [vmem:[%s1401_s10 + $0x70] sm:$0xff]  ;;  %v344_v56 = vunpack.c.h.s8.bf16 %v328_v46  ;;  %s273_s10 = sand.u32 1, %s1244_s19   ;;  %s1190_s8 = scalar_lea.vmem %s1189_s16, 4096 }
  0x22   : > { %1002 = vmatpush3.bf16.msra.mxu0 %v1143_v8  ;;  %1070 = vmatpush3.bf16.msra.mxu1 %v1143_v8  ;;  %s963_s14 = sshll.u32 %s273_s10, 7  ;;  %s1528_s21 = scalar_lea.sflag [#allocation3], %s273_s10 }
  0x23   : > { %1003 = vmatprep.subr.bf16.mxu0 %v1144_v9  ;;  %1063 = vmatprep.subr.bf16.mxu1 %v1144_v9  ;;  %s1477_s24 = scalar_lea.vmem [#allocation2], %s963_s14 }
  0x24   : > { %s856_s15 = sshll.u32 %s1477_s24, 4  ;;  %s1522_s15 = int_to_ptr.vmem [resolvable:$true] %s856_s15 }
  0x25   : > { %686 = vperm.xlu1 %1135, %v648_v27   ;;  %691 = vperm.xlu0 %1134, %v649_v34   ;;  %s1184_s29 = scalar_lea.vmem %s1522_s15, 2048  ;;  %p1191_p2 = scmp.lt.s32.totalorder %s1522_s15, %s1189_s16 }
  0x26   : > { %1004 = vmatpush3.bf16.msra.mxu0 %v1145_v10  ;;  %1071 = vmatpush3.bf16.msra.mxu1 %v1145_v10  ;;  %v1451_v10 = vld [vmem:[%s1576_s3] ss:$0 sm:$0xff]  ;;  %p1185_p13 = scmp.ne.s32.totalorder %s1522_s15, %s1184_s29  ;;  %p1192_p3 = scmp.lt.s32.totalorder %s1190_s8, %s1184_s29 }
  0x27   : > { %1005 = vmatprep.subr.bf16.mxu0 %v1146_v11  ;;  %1064 = vmatprep.subr.bf16.mxu1 %v1146_v11 }
  0x28   : > { %p1186_p0 = pnand %p1185_p13, %p1336_p4  ;;  %p1193_p5 = por %p1192_p3, %p1191_p2 }
  0x29   : > { %696 = vperm.xlu1 %1135, %v650_v33   ;;  %701 = vperm.xlu0 %1134, %v651_v38  }
  0x2a   : > { %1006 = vmatpush3.bf16.msra.mxu0 %v1147_v16  ;;  %1072 = vmatpush3.bf16.msra.mxu1 %v1147_v16  ;;  %p1187_p1 = pneg %p1186_p0 }
  0x2b   : > { %1007 = vmatprep.subr.bf16.mxu0 %v1148_v19  ;;  %1065 = vmatprep.subr.bf16.mxu1 %v1148_v19 }
  0x2c   : > { %p1194_p6 = pnand %p1193_p5, %p1187_p1 }
  0x2d   : > { %706 = vperm.xlu1 %1135, %v652_v37   ;;  %711 = vperm.xlu0 %1134, %v653_v44  }
  0x2e   : > { %1008 = vmatpush3.bf16.msra.mxu0 %v1149_v20  ;;  %1073 = vmatpush3.bf16.msra.mxu1 %v1149_v20 }
  0x2f   : > { %1009 = vmatprep.subr.bf16.mxu0 %v1150_v23  ;;  %1066 = vmatprep.subr.bf16.mxu1 %v1150_v23 }
  0x31   : > { %716 = vperm.xlu1 %1135, %v654_v43   ;;  %721 = vperm.xlu0 %1134, %v655_v48  }
  0x32   : > { %1010 = vmatpush3.bf16.msra.mxu0 %v1151_v24  ;;  %1074 = vmatpush3.bf16.msra.mxu1 %v1151_v24 }
  0x35   : > { %528 = vmatmul.mubr.bf16.vlgmr.msra.gmra.mxu0 %v330_v29  ;;  %560 = vmatmul.mubr.bf16.vlgmr.msra.gmra.mxu1 %v338_v30 }
  0x36   : > { %535 = vmatprep.mubr.bf16.mxu0 %v333_v31  ;;  %567 = vmatprep.mubr.bf16.mxu1 %v341_v32 }
  0x37   : > { %726 = vperm.xlu1 %1135, %v656_v47   ;;  %731 = vperm.xlu0 %1134, %v657_v54   ;;  %v794_v54 = vld [vmem:[%s1465_s13] sm:$0xff] }
  0x3b   : > { %736 = vperm.xlu1 %1135, %v658_v53  }
  0x3d   : > { %536 = vmatmul.mubr.bf16.gmra.mxu0 %v332_v39  ;;  %568 = vmatmul.mubr.bf16.gmra.mxu1 %v340_v40 }
  0x3e   : > { %543 = vmatprep.mubr.bf16.mxu0 %v335_v41  ;;  %575 = vmatprep.mubr.bf16.mxu1 %v343_v42 }
  0x45   : > { %544 = vmatmul.mubr.bf16.gmra.mxu0 %v334_v49  ;;  %576 = vmatmul.mubr.bf16.gmra.mxu1 %v342_v50 }
  0x46   : > { %551 = vmatprep.mubr.bf16.mxu0 %v337_v51  ;;  %583 = vmatprep.mubr.bf16.mxu1 %v345_v52 }
  0x4d   : > { %552 = vmatmul.mubr.bf16.gmra.mxu0 %v336_v55  ;;  %584 = vmatmul.mubr.bf16.gmra.mxu1 %v344_v56 }
  0x94   : > { %v662_v57 = vpop.permute.xlu0 %661 }
  0x98   : > { %v672_v58 = vpop.permute.xlu1 %671  ;;  %v667_v59 = vpop.permute.xlu0 %666 }
  0x9c   : > { %v677_v60 = vpop.permute.xlu1 %676  ;;  %v1440_v61 = vpop.permute.xlu0 %681 }
  0xa0   : > { %v1442_v62 = vpop.permute.xlu1 %686  ;;  %v1444_v63 = vpop.permute.xlu0 %691 }
  0xa4   : > { %v1446_v4 = vpop.permute.xlu1 %696  ;;  %v702_v9 = vpop.permute.xlu0 %701 }
  0xa8   : > { %v707_v19 = vpop.permute.xlu1 %706  ;;  %v712_v34 = vpop.permute.xlu0 %711 }
  0xac   : > { %v717_v41 = vpop.permute.xlu1 %716 }
  0xf5   : > { %v1011_v0 = vpop.f32.mrf.mxu0  ;;  %v1035_v1 = vpop.f32.mrf.mxu1 }
  0xf7   : > { %v1012_v2 = vpop.f32.mrf.mxu0  ;;  %v1036_v3 = vpop.f32.mrf.mxu1 }
  0xf8   : > { %v1013_v5 = vadd.f32 %v1012_v2, %v1011_v0  ;;  %v1037_v6 = vadd.f32 %v1036_v3, %v1035_v1 }
  0xf9   : > { %v1014_v7 = vpop.f32.mrf.mxu0  ;;  %v1038_v8 = vpop.f32.mrf.mxu1 }
  0xfa   : > { %v739_v13 = vmul.f32 %v1013_v5, %v662_v57  ;;  %v747_v14 = vmul.f32 %v1037_v6, %v702_v9  ;;  %v802_v57 = vld [vmem:[%s1465_s13 + $0x40] sm:$0xff] }
  0xfb   : > { %v1015_v11 = vpop.f32.mrf.mxu0  ;;  %v1039_v12 = vpop.f32.mrf.mxu1 }
  0xfc   : > { %v1016_v15 = vadd.f32 %v1015_v11, %v1014_v7  ;;  %v1040_v16 = vadd.f32 %v1039_v12, %v1038_v8  ;;  %v762_v20 = vadd.f32 %v1451_v10, %v739_v13  ;;  %v770_v21 = vadd.f32 %v1451_v10, %v747_v14  ;;  %v727_v8 = vpop.permute.xlu1 %726  ;;  %v795_v12 = vld [vmem:[%s1465_s13 + $0x8] sm:$0xff] }
  0xfd   : > { %v1017_v17 = vpop.f32.mrf.mxu0  ;;  %v1041_v18 = vpop.f32.mrf.mxu1 }
  0xfe   : > { %1152 = vtanh.f32 %v762_v20  ;;  %v740_v24 = vmul.f32 %v1016_v15, %v667_v59  ;;  %v748_v25 = vmul.f32 %v1040_v16, %v707_v19 }
  0xff   : > { %v1018_v22 = vpop.f32.mrf.mxu0  ;;  %v1042_v23 = vpop.f32.mrf.mxu1  ;;  %1154 = vtanh.f32 %v770_v21 }
 0x100   : > { %v1019_v26 = vadd.f32 %v1018_v22, %v1017_v17  ;;  %v1043_v27 = vadd.f32 %v1042_v23, %v1041_v18  ;;  %v763_v30 = vadd.f32 %v1451_v10, %v740_v24  ;;  %v771_v31 = vadd.f32 %v1451_v10, %v748_v25 }
 0x101   : > { %v1020_v28 = vpop.f32.mrf.mxu0  ;;  %v1044_v29 = vpop.f32.mrf.mxu1 }
 0x102   : > { %1156 = vtanh.f32 %v763_v30  ;;  %v741_v35 = vmul.f32 %v1019_v26, %v672_v58  ;;  %v749_v38 = vmul.f32 %v1043_v27, %v712_v34  ;;  %v722_v58 = vpop.permute.xlu0 %721  ;;  %v804_v30 = vld [vmem:[%s1465_s13 + $0x50] sm:$0xff] }
 0x103   : > { %v1021_v32 = vpop.f32.mrf.mxu0  ;;  %v1045_v33 = vpop.f32.mrf.mxu1  ;;  %1158 = vtanh.f32 %v771_v31 }
 0x104   : > { %v1022_v36 = vadd.f32 %v1021_v32, %v1020_v28  ;;  %v1046_v37 = vadd.f32 %v1045_v33, %v1044_v29  ;;  %v764_v42 = vadd.f32 %v1451_v10, %v741_v35  ;;  %v772_v43 = vadd.f32 %v1451_v10, %v749_v38  ;;  %v796_v28 = vld [vmem:[%s1465_s13 + $0x10] sm:$0xff] }
 0x105   : > { %v1023_v39 = vpop.f32.mrf.mxu0  ;;  %v1047_v40 = vpop.f32.mrf.mxu1 }
 0x106   : > { %1160 = vtanh.f32 %v764_v42  ;;  %v742_v46 = vmul.f32 %v1022_v36, %v677_v60  ;;  %v750_v47 = vmul.f32 %v1046_v37, %v717_v41  ;;  %v732_v31 = vpop.permute.xlu0 %731  ;;  %v737_v41 = vpop.permute.xlu1 %736  ;;  %v797_v42 = vld [vmem:[%s1465_s13 + $0x18] sm:$0xff] }
 0x107   : > { %v1024_v44 = vpop.f32.mrf.mxu0  ;;  %v1048_v45 = vpop.f32.mrf.mxu1  ;;  %1162 = vtanh.f32 %v772_v43 }
 0x108   : > { %v1025_v48 = vadd.f32 %v1024_v44, %v1023_v39  ;;  %v1049_v49 = vadd.f32 %v1048_v45, %v1047_v40  ;;  %v765_v52 = vadd.f32 %v1451_v10, %v742_v46  ;;  %v773_v53 = vadd.f32 %v1451_v10, %v750_v47 }
 0x109   : > { %v1026_v50 = vpop.f32.mrf.mxu0  ;;  %v1050_v51 = vpop.f32.mrf.mxu1 }
 0x10a   : > { %1164 = vtanh.f32 %v765_v52  ;;  %v743_v59 = vmul.f32 %v1025_v48, %v1440_v61  ;;  %v751_v2 = vmul.f32 %v1049_v49, %v722_v58  ;;  %v803_v61 = vld [vmem:[%s1465_s13 + $0x48] sm:$0xff]  ;;  %v798_v52 = vld [vmem:[%s1465_s13 + $0x20] sm:$0xff] }
 0x10b   : > { %v1027_v55 = vpop.f32.mrf.mxu0  ;;  %v1051_v56 = vpop.f32.mrf.mxu1  ;;  %1166 = vtanh.f32 %v773_v53  ;;  %v806_v53 = vld [vmem:[%s1465_s13 + $0x60] sm:$0xff] }
 0x10c   : > { %v1028_v60 = vadd.f32 %v1027_v55, %v1026_v50  ;;  %v1052_v0 = vadd.f32 %v1051_v56, %v1050_v51  ;;  %v1153_v1 = vpop.eup %1152  ;;  %v766_v9 = vadd.f32 %v1451_v10, %v743_v59  ;;  %v774_v13 = vadd.f32 %v1451_v10, %v751_v2  ;;  %v808_v2 = vld [vmem:[%s1465_s13 + $0x70] sm:$0xff] }
 0x10d   : > { %v1029_v3 = vpop.f32.mrf.mxu0  ;;  %v1053_v5 = vpop.f32.mrf.mxu1  ;;  %v810_v7 = vmul.f32 %v1153_v1, %v794_v54  ;;  %v800_v1 = vld [vmem:[%s1465_s13 + $0x30] sm:$0xff] }
 0x10e   : > { %v1155_v6 = vpop.eup %1154  ;;  %1168 = vtanh.f32 %v766_v9  ;;  %v744_v16 = vmul.f32 %v1028_v60, %v1442_v62  ;;  %v752_v17 = vmul.f32 %v1052_v0, %v727_v8  ;;  %v801_v8 = vld [vmem:[%s1465_s13 + $0x38] sm:$0xff] }
 0x10f   : > { %v818_v11 = vmul.f32 %v1155_v6, %v802_v57  ;;  %v1030_v14 = vpop.f32.mrf.mxu0  ;;  %v1054_v15 = vpop.f32.mrf.mxu1  ;;  %826 = vst [vmem:[%s1477_s24] sm:$0xff] %v810_v7  ;;  %1170 = vtanh.f32 %v774_v13  ;;  %v799_v57 = vld [vmem:[%s1465_s13 + $0x28] sm:$0xff]  ;;  %v809_v9 = vld [vmem:[%s1465_s13 + $0x78] sm:$0xff] }
 0x110   : > { %v1031_v18 = vadd.f32 %v1030_v14, %v1029_v3  ;;  %v1157_v19 = vpop.eup %1156  ;;  %v1055_v20 = vadd.f32 %v1054_v15, %v1053_v5  ;;  %v767_v25 = vadd.f32 %v1451_v10, %v744_v16  ;;  %v775_v26 = vadd.f32 %v1451_v10, %v752_v17 }
 0x111   : > { %834 = vst [vmem:[%s1477_s24 + $0x40] sm:$0xff] %v818_v11  ;;  %v1032_v21 = vpop.f32.mrf.mxu0  ;;  %v1056_v22 = vpop.f32.mrf.mxu1  ;;  %v811_v24 = vmul.f32 %v1157_v19, %v795_v12 }
 0x112   : > { %v1159_v23 = vpop.eup %1158  ;;  %1172 = vtanh.f32 %v767_v25  ;;  %v745_v32 = vmul.f32 %v1031_v18, %v1444_v63  ;;  %v753_v36 = vmul.f32 %v1055_v20, %v732_v31  ;;  %v805_v63 = vld [vmem:[%s1465_s13 + $0x58] sm:$0xff] }
 0x113   : > { %v819_v27 = vmul.f32 %v1159_v23, %v803_v61  ;;  %v1033_v62 = vpop.f32.mrf.mxu0  ;;  %v1057_v29 = vpop.f32.mrf.mxu1  ;;  %827 = vst [vmem:[%s1477_s24 + $0x8] sm:$0xff] %v811_v24  ;;  %1174 = vtanh.f32 %v775_v26 }
 0x114   : > { %v1034_v33 = vadd.f32 %v1033_v62, %v1032_v21  ;;  %v1058_v34 = vadd.f32 %v1057_v29, %v1056_v22  ;;  %v1161_v35 = vpop.eup %1160  ;;  %v768_v39 = vadd.f32 %v1451_v10, %v745_v32  ;;  %v776_v43 = vadd.f32 %v1451_v10, %v753_v36 }
 0x115   : > { %835 = vst [vmem:[%s1477_s24 + $0x48] sm:$0xff] %v819_v27  ;;  %v1163_v37 = vpop.eup %1162  ;;  %v812_v38 = vmul.f32 %v1161_v35, %v796_v28 }
 0x116   : > { %v820_v40 = vmul.f32 %v1163_v37, %v804_v30  ;;  %1176 = vtanh.f32 %v768_v39  ;;  %v746_v44 = vmul.f32 %v1034_v33, %v1446_v4  ;;  %v754_v45 = vmul.f32 %v1058_v34, %v737_v41 }
 0x117   : > { %828 = vst [vmem:[%s1477_s24 + $0x10] sm:$0xff] %v812_v38  ;;  %v1165_v46 = vpop.eup %1164  ;;  %1178 = vtanh.f32 %v776_v43 }
 0x118   : > { %836 = vst [vmem:[%s1477_s24 + $0x50] sm:$0xff] %v820_v40  ;;  %v1167_v47 = vpop.eup %1166  ;;  %v813_v48 = vmul.f32 %v1165_v46, %v797_v42  ;;  %v769_v49 = vadd.f32 %v1451_v10, %v746_v44  ;;  %v777_v50 = vadd.f32 %v1451_v10, %v754_v45  ;;  %v807_v10 = vld [vmem:[%s1465_s13 + $0x68] sm:$0xff] }
 0x119   : > { %v821_v51 = vmul.f32 %v1167_v47, %v805_v63 }
 0x11a   : > { %829 = vst [vmem:[%s1477_s24 + $0x18] sm:$0xff] %v813_v48  ;;  %1180 = vtanh.f32 %v769_v49 }
 0x11b   : > { %v1169_v4 = vpop.eup %1168  ;;  %837 = vst [vmem:[%s1477_s24 + $0x58] sm:$0xff] %v821_v51  ;;  %1182 = vtanh.f32 %v777_v50 }
 0x11c   : > { %v1171_v54 = vpop.eup %1170  ;;  %v814_v55 = vmul.f32 %v1169_v4, %v798_v52 }
 0x11d   : > { %v822_v56 = vmul.f32 %v1171_v54, %v806_v53 }
 0x11e   : > { %830 = vst [vmem:[%s1477_s24 + $0x20] sm:$0xff] %v814_v55 }
 0x11f   : > { %v1173_v58 = vpop.eup %1172  ;;  %838 = vst [vmem:[%s1477_s24 + $0x60] sm:$0xff] %v822_v56 }
 0x120   : > { %v1175_v59 = vpop.eup %1174  ;;  %v815_v60 = vmul.f32 %v1173_v58, %v799_v57 }
 0x121   : > { %v823_v0 = vmul.f32 %v1175_v59, %v807_v10 }
 0x122   : > { %831 = vst [vmem:[%s1477_s24 + $0x28] sm:$0xff] %v815_v60 }
 0x123   : > { %v1177_v3 = vpop.eup %1176  ;;  %839 = vst [vmem:[%s1477_s24 + $0x68] sm:$0xff] %v823_v0 }
 0x124   : > { %v1179_v5 = vpop.eup %1178  ;;  %v816_v6 = vmul.f32 %v1177_v3, %v800_v1 }
 0x125   : > { %v824_v7 = vmul.f32 %v1179_v5, %v808_v2 }
 0x126   : > { %832 = vst [vmem:[%s1477_s24 + $0x30] sm:$0xff] %v816_v6 }
 0x127   : > { %v1181_v11 = vpop.eup %1180  ;;  %840 = vst [vmem:[%s1477_s24 + $0x70] sm:$0xff] %v824_v7 }
 0x128   : > { %v1183_v12 = vpop.eup %1182  ;;  %v817_v13 = vmul.f32 %v1181_v11, %v801_v8 }
 0x129   : > { %v825_v14 = vmul.f32 %v1183_v12, %v809_v9 }
 0x12a   : > { %833 = vst [vmem:[%s1477_s24 + $0x38] sm:$0xff] %v817_v13 }
 0x12b   : > { %841 = vst [vmem:[%s1477_s24 + $0x78] sm:$0xff] %v825_v14 }
 0x12c   : > { %1197 = shalt.err (!%p1194_p6)
}
 0x12d   : > { %s1198_s10 = scalar_lea.hbm %s1520_s27, 2048  ;;  %s1202_s13 = scalar_lea.hbm %s1578_s5, 4096 }
 0x12e   : > { %p1199_p7 = scmp.ne.s32.totalorder %s1520_s27, %s1198_s10  ;;  %p1203_p11 = scmp.lt.s32.totalorder %s1520_s27, %s1578_s5 }
 0x12f   : > { %p1204_p12 = scmp.lt.s32.totalorder %s1202_s13, %s1198_s10 }
 0x130   : > { %p1200_p9 = pnand %p1199_p7, %p1336_p4 }
 0x131   : > { %p1205_p13 = por %p1204_p12, %p1203_p11 }
 0x132   : > { %p1201_p10 = pneg %p1200_p9 }
 0x134   : > { %p1206_p0 = pnand %p1205_p13, %p1201_p10 }
 0x136   : > { %1209 = shalt.err (!%p1206_p0)
}
 0x137   : > { %s1264_s9 = smov 128   ;;  %s1265_s17 = smov 8  }
 0x138   : > { %1075 = dma.vmem_to_hbm [thread:$0]  (%p1336_p4), %s1522_s15, 2048, %s1520_s27, %s1528_s21, %s1264_s9, %s1264_s9, %s1265_s17  }
 0x139 PF: > { %p1081_p1 = scmp.ge.s32.totalorder %s1260_s23, 2  ;;  %s871_s25 = sand.u32 1, %s1240_s18  }
 0x13a   : > { %s872_s29 = scalar_lea.sflag [#allocation3], %s871_s25 }
 0x13b   : > { %p1078_p2 = pnand %p1081_p1, %p1343_p8 }
 0x13d   : > { %p1079_p3 = pneg %p1078_p2 }
 0x13f   : > { %1235 = dma.done.wait (%p1079_p3), %s872_s29, 2048  }
 0x140   : > { %1237 = vsyncadd (%p1079_p3), %s872_s29, 4294965248  ;;  %s18_s23 = sadd.s32 1, %s1260_s23   ;;  %s1581_s18 = smov %s1244_s19 }
 0x141   : > { %p15_p5 = scmp.ge.s32.totalorder %s18_s23, 4   ;;  %s1582_s19 = smov %s1248_s20 }
 0x142   : > { %s1583_s20 = smov %s1349_s6  ;;  %s1584_s21 = smov %s1256_s22 }
 0x143   : > { %s1585_s22 = smov %s1587_s26  ;;  %17 = sbr.rel (!%p15_p5) target bundleno = 4 (0x4), region = 90 }
 0x148   :  { %877 = vsyncpa [#allocation3], 1 }
 0x149   :  { %879 = vsyncpa [#allocation3 + $0x1], 1 }

// kernel: spatial_gating_unit.2
= control target key start
LH: loop header
LB: loop body
LE: loop exit
PB: predicated region body
PF: predicated region fallthrough
CT: control target
= control target key end

     0   :  { %s2126_s0 = inlined_call_operand.vmem [shape: f32[256,128], index: 0, kind: input, shape index: {}]   ;;  %s2127_s3 = inlined_call_operand.vmem [shape: bf16[128,128], index: 3, kind: input, shape index: {}]   ;;  %s2128_s4 = inlined_call_operand.vmem [shape: f32[256,1], index: 4, kind: input, shape index: {}]   ;;  %s2129_s1 = inlined_call_operand.vmem [shape: f32[1,128], index: 1, kind: input, shape index: {}]   ;;  %s2130_s2 = inlined_call_operand.vmem [shape: f32[1,128], index: 2, kind: input, shape index: {}]   ;;  %s2131_s5 = inlined_call_operand.vmem [shape: bf16[256,128], index: 5, kind: output, shape index: {}]  }
   0x1   :  { %v1479_v0 = vld [vmem:[%s2126_s0] sm:$0xff]  ;;  %v1491_v2 = vld [vmem:[%s2126_s0 + $0x8] sm:$0xff]  ;;  %v1503_v4 = vld [vmem:[%s2126_s0 + $0x10] sm:$0xff] }
   0x2   :  { %v1484_v1 = vld [vmem:[%s2126_s0 + $0x80] sm:$0xff]  ;;  %53 = vadd.xlane.f32.xlu0 %v1479_v0  ;;  %v1496_v3 = vld [vmem:[%s2126_s0 + $0x88] sm:$0xff]  ;;  %v1508_v5 = vld [vmem:[%s2126_s0 + $0x18] sm:$0xff] }
   0x3   :  { %85 = vadd.xlane.f32.xlu1 %v1484_v1  ;;  %v1515_v6 = vld [vmem:[%s2126_s0 + $0x90] sm:$0xff]  ;;  %v1520_v7 = vld [vmem:[%s2126_s0 + $0x98] sm:$0xff]  ;;  %v1527_v8 = vld [vmem:[%s2126_s0 + $0x20] sm:$0xff] }
   0x4   :  { %v1532_v9 = vld [vmem:[%s2126_s0 + $0x28] sm:$0xff]  ;;  %v1539_v10 = vld [vmem:[%s2126_s0 + $0xa0] sm:$0xff]  ;;  %v1551_v12 = vld [vmem:[%s2126_s0 + $0x30] sm:$0xff] }
   0x5   :  { %v1544_v11 = vld [vmem:[%s2126_s0 + $0xa8] sm:$0xff]  ;;  %v1556_v13 = vld [vmem:[%s2126_s0 + $0x38] sm:$0xff]  ;;  %v1563_v14 = vld [vmem:[%s2126_s0 + $0xb0] sm:$0xff] }
   0x6   :  { %55 = vadd.xlane.f32.xlu0 %v1491_v2  ;;  %v1568_v15 = vld [vmem:[%s2126_s0 + $0xb8] sm:$0xff]  ;;  %v1575_v16 = vld [vmem:[%s2126_s0 + $0x40] sm:$0xff]  ;;  %v1580_v17 = vld [vmem:[%s2126_s0 + $0x48] sm:$0xff] }
   0x7   :  { %87 = vadd.xlane.f32.xlu1 %v1496_v3  ;;  %v1587_v18 = vld [vmem:[%s2126_s0 + $0xc0] sm:$0xff]  ;;  %v1592_v19 = vld [vmem:[%s2126_s0 + $0xc8] sm:$0xff]  ;;  %v1599_v20 = vld [vmem:[%s2126_s0 + $0x50] sm:$0xff] }
   0x8   :  { %v1604_v21 = vld [vmem:[%s2126_s0 + $0x58] sm:$0xff]  ;;  %v1611_v22 = vld [vmem:[%s2126_s0 + $0xd0] sm:$0xff]  ;;  %v1623_v24 = vld [vmem:[%s2126_s0 + $0x60] sm:$0xff] }
   0x9   :  { %v1616_v23 = vld [vmem:[%s2126_s0 + $0xd8] sm:$0xff]  ;;  %v1628_v25 = vld [vmem:[%s2126_s0 + $0x68] sm:$0xff]  ;;  %v1635_v26 = vld [vmem:[%s2126_s0 + $0xe0] sm:$0xff] }
   0xa   :  { %57 = vadd.xlane.f32.xlu0 %v1503_v4  ;;  %v1640_v27 = vld [vmem:[%s2126_s0 + $0xe8] sm:$0xff]  ;;  %v1647_v28 = vld [vmem:[%s2126_s0 + $0x70] sm:$0xff]  ;;  %v1652_v29 = vld [vmem:[%s2126_s0 + $0x78] sm:$0xff] }
   0xb   :  { %59 = vadd.xlane.f32.xlu1 %v1508_v5  ;;  %v1659_v30 = vld [vmem:[%s2126_s0 + $0xf0] sm:$0xff]  ;;  %v1664_v31 = vld [vmem:[%s2126_s0 + $0xf8] sm:$0xff]  ;;  %v1375_v34 = vld [vmem:[%s2127_s3 + $0x28] sm:$0xff]  }
   0xc   :  { %v1373_v32 = vld [vmem:[%s2127_s3 + $0x38] sm:$0xff]   ;;  %v1374_v33 = vld [vmem:[%s2127_s3 + $0x30] sm:$0xff]   ;;  %v1376_v35 = vld [vmem:[%s2127_s3 + $0x20] sm:$0xff]  }
   0xd   :  { %1306 = vmatprep.subr.bf16.mxu0 %v1373_v32  ;;  %1354 = vmatprep.subr.bf16.mxu1 %v1373_v32 }
   0xe   :  { %89 = vadd.xlane.f32.xlu0 %v1515_v6  ;;  %1307 = vmatpush3.bf16.xpose.msra.mxu0 %v1373_v32 }
   0xf   :  { %91 = vadd.xlane.f32.xlu1 %v1520_v7  ;;  %1362 = vmatpush3.bf16.xpose.msra.mxu1 %v1373_v32 }
  0x10   :  { %1308 = vmatprep.subr.bf16.mxu0 %v1374_v33  ;;  %1355 = vmatprep.subr.bf16.mxu1 %v1374_v33 }
  0x12   :  { %61 = vadd.xlane.f32.xlu0 %v1527_v8 }
  0x13   :  { %63 = vadd.xlane.f32.xlu1 %v1532_v9 }
  0x16   :  { %93 = vadd.xlane.f32.xlu0 %v1539_v10  ;;  %1309 = vmatpush3.bf16.xpose.msra.mxu0 %v1374_v33 }
  0x17   :  { %95 = vadd.xlane.f32.xlu1 %v1544_v11  ;;  %1363 = vmatpush3.bf16.xpose.msra.mxu1 %v1374_v33 }
  0x18   :  { %1310 = vmatprep.subr.bf16.mxu0 %v1375_v34  ;;  %1356 = vmatprep.subr.bf16.mxu1 %v1375_v34 }
  0x1a   :  { %65 = vadd.xlane.f32.xlu0 %v1551_v12 }
  0x1b   :  { %67 = vadd.xlane.f32.xlu1 %v1556_v13 }
  0x1e   :  { %97 = vadd.xlane.f32.xlu0 %v1563_v14  ;;  %1311 = vmatpush3.bf16.xpose.msra.mxu0 %v1375_v34 }
  0x1f   :  { %99 = vadd.xlane.f32.xlu1 %v1568_v15  ;;  %1364 = vmatpush3.bf16.xpose.msra.mxu1 %v1375_v34 }
  0x20   :  { %1312 = vmatprep.subr.bf16.mxu0 %v1376_v35  ;;  %1357 = vmatprep.subr.bf16.mxu1 %v1376_v35 }
  0x22   :  { %69 = vadd.xlane.f32.xlu0 %v1575_v16 }
  0x23   :  { %71 = vadd.xlane.f32.xlu1 %v1580_v17 }
  0x26   :  { %101 = vadd.xlane.f32.xlu0 %v1587_v18  ;;  %1313 = vmatpush3.bf16.xpose.msra.mxu0 %v1376_v35 }
  0x27   :  { %103 = vadd.xlane.f32.xlu1 %v1592_v19  ;;  %1365 = vmatpush3.bf16.xpose.msra.mxu1 %v1376_v35 }
  0x2a   :  { %73 = vadd.xlane.f32.xlu0 %v1599_v20 }
  0x2b   :  { %75 = vadd.xlane.f32.xlu1 %v1604_v21 }
  0x2e   :  { %105 = vadd.xlane.f32.xlu0 %v1611_v22 }
  0x2f   :  { %107 = vadd.xlane.f32.xlu1 %v1616_v23 }
  0x32   :  { %77 = vadd.xlane.f32.xlu0 %v1623_v24 }
  0x33   :  { %79 = vadd.xlane.f32.xlu1 %v1628_v25 }
  0x36   :  { %109 = vadd.xlane.f32.xlu0 %v1635_v26 }
  0x37   :  { %111 = vadd.xlane.f32.xlu1 %v1640_v27 }
  0x3a   :  { %81 = vadd.xlane.f32.xlu0 %v1647_v28 }
  0x3b   :  { %83 = vadd.xlane.f32.xlu1 %v1652_v29 }
  0x3e   :  { %113 = vadd.xlane.f32.xlu0 %v1659_v30 }
  0x3f   :  { %115 = vadd.xlane.f32.xlu1 %v1664_v31 }
  0x8b   :  { %v54_v36 = vpop.xlane.xlu0 %53 }
  0x8c   :  { %v86_v37 = vpop.xlane.xlu1 %85  ;;  %v118_v38 = vmul.f32 0.0078125, %v54_v36 }
  0x8d   :  { %v134_v39 = vmul.f32 0.0078125, %v86_v37 }
  0x8e   :  { %v1681_v40 = vsub.f32 %v1479_v0, %v118_v38 }
  0x8f   :  { %v1684_v41 = vsub.f32 %v1484_v1, %v134_v39  ;;  %v56_v42 = vpop.xlane.xlu0 %55 }
  0x90   :  { %v88_v43 = vpop.xlane.xlu1 %87  ;;  %v119_v44 = vmul.f32 0.0078125, %v56_v42  ;;  %v182_v45 = vmul.f32 %v1681_v40, %v1681_v40 }
  0x91   :  { %v135_v46 = vmul.f32 0.0078125, %v88_v43  ;;  %v198_v48 = vmul.f32 %v1684_v41, %v1684_v41 }
  0x92   :  { %v1689_v47 = vsub.f32 %v1491_v2, %v119_v44  ;;  %214 = vadd.xlane.f32.xlu0 %v182_v45 }
  0x93   :  { %v1694_v49 = vsub.f32 %v1496_v3, %v135_v46  ;;  %v58_v50 = vpop.xlane.xlu0 %57 }
  0x94   :  { %v60_v51 = vpop.xlane.xlu1 %59  ;;  %v120_v52 = vmul.f32 0.0078125, %v58_v50  ;;  %v183_v53 = vmul.f32 %v1689_v47, %v1689_v47 }
  0x95   :  { %v121_v54 = vmul.f32 0.0078125, %v60_v51  ;;  %v199_v57 = vmul.f32 %v1694_v49, %v1694_v49 }
  0x96   :  { %v1699_v55 = vsub.f32 %v1503_v4, %v120_v52  ;;  %246 = vadd.xlane.f32.xlu0 %v198_v48  ;;  %216 = vadd.xlane.f32.xlu1 %v183_v53 }
  0x97   :  { %v1702_v56 = vsub.f32 %v1508_v5, %v121_v54  ;;  %v90_v58 = vpop.xlane.xlu0 %89 }
  0x98   :  { %v92_v59 = vpop.xlane.xlu1 %91  ;;  %v136_v60 = vmul.f32 0.0078125, %v90_v58  ;;  %v184_v61 = vmul.f32 %v1699_v55, %v1699_v55 }
  0x99   :  { %v137_v62 = vmul.f32 0.0078125, %v92_v59  ;;  %v185_v1 = vmul.f32 %v1702_v56, %v1702_v56 }
  0x9a   :  { %v1709_v63 = vsub.f32 %v1515_v6, %v136_v60  ;;  %248 = vadd.xlane.f32.xlu1 %v199_v57  ;;  %218 = vadd.xlane.f32.xlu0 %v184_v61 }
  0x9b   :  { %v1712_v0 = vsub.f32 %v1520_v7, %v137_v62  ;;  %v62_v2 = vpop.xlane.xlu0 %61 }
  0x9c   :  { %v64_v3 = vpop.xlane.xlu1 %63  ;;  %v122_v4 = vmul.f32 0.0078125, %v62_v2  ;;  %v200_v5 = vmul.f32 %v1709_v63, %v1709_v63 }
  0x9d   :  { %v123_v32 = vmul.f32 0.0078125, %v64_v3  ;;  %v201_v7 = vmul.f32 %v1712_v0, %v1712_v0 }
  0x9e   :  { %v1719_v33 = vsub.f32 %v1527_v8, %v122_v4  ;;  %220 = vadd.xlane.f32.xlu1 %v185_v1  ;;  %250 = vadd.xlane.f32.xlu0 %v200_v5  ;;  %v1377_v8 = vld [vmem:[%s2127_s3 + $0x18] sm:$0xff]  }
  0x9f   :  { %v1722_v6 = vsub.f32 %v1532_v9, %v123_v32  ;;  %v94_v34 = vpop.xlane.xlu0 %93  ;;  %1314 = vmatprep.subr.bf16.mxu0 %v1377_v8  ;;  %1358 = vmatprep.subr.bf16.mxu1 %v1377_v8 }
  0xa0   :  { %v96_v35 = vpop.xlane.xlu1 %95  ;;  %v138_v36 = vmul.f32 0.0078125, %v94_v34  ;;  %v186_v37 = vmul.f32 %v1719_v33, %v1719_v33  ;;  %1315 = vmatpush3.bf16.xpose.msra.mxu0 %v1377_v8  ;;  %1366 = vmatpush3.bf16.xpose.msra.mxu1 %v1377_v8  ;;  %v1445_v8 = vmov 0  }
  0xa1   :  { %v139_v38 = vmul.f32 0.0078125, %v96_v35  ;;  %v187_v42 = vmul.f32 %v1722_v6, %v1722_v6  ;;  %1372 = vset.pattern.permute.xlu1 %v1445_v8  ;;  %1371 = vset.pattern.permute.xlu0 %v1445_v8 }
  0xa2   :  { %v1732_v39 = vsub.f32 %v1539_v10, %v138_v36  ;;  %252 = vadd.xlane.f32.xlu1 %v201_v7  ;;  %222 = vadd.xlane.f32.xlu0 %v186_v37 }
  0xa3   :  { %v1735_v9 = vsub.f32 %v1544_v11, %v139_v38  ;;  %v66_v43 = vpop.xlane.xlu0 %65 }
  0xa4   :  { %v68_v44 = vpop.xlane.xlu1 %67  ;;  %v124_v45 = vmul.f32 0.0078125, %v66_v43  ;;  %v202_v46 = vmul.f32 %v1732_v39, %v1732_v39 }
  0xa5   :  { %v125_v48 = vmul.f32 0.0078125, %v68_v44  ;;  %v203_v50 = vmul.f32 %v1735_v9, %v1735_v9 }
  0xa6   :  { %v1742_v10 = vsub.f32 %v1551_v12, %v124_v45  ;;  %224 = vadd.xlane.f32.xlu1 %v187_v42  ;;  %254 = vadd.xlane.f32.xlu0 %v202_v46  ;;  %v1378_v12 = vld [vmem:[%s2127_s3 + $0x10] sm:$0xff]  }
  0xa7   :  { %v1745_v11 = vsub.f32 %v1556_v13, %v125_v48  ;;  %v98_v51 = vpop.xlane.xlu0 %97  ;;  %1316 = vmatprep.subr.bf16.mxu0 %v1378_v12  ;;  %1359 = vmatprep.subr.bf16.mxu1 %v1378_v12 }
  0xa8   :  { %v100_v52 = vpop.xlane.xlu1 %99  ;;  %v140_v53 = vmul.f32 0.0078125, %v98_v51  ;;  %v188_v54 = vmul.f32 %v1742_v10, %v1742_v10  ;;  %1317 = vmatpush3.bf16.xpose.msra.mxu0 %v1378_v12  ;;  %1367 = vmatpush3.bf16.xpose.msra.mxu1 %v1378_v12 }
  0xa9   :  { %v141_v57 = vmul.f32 0.0078125, %v100_v52  ;;  %v189_v59 = vmul.f32 %v1745_v11, %v1745_v11 }
  0xaa   :  { %v1755_v58 = vsub.f32 %v1563_v14, %v140_v53  ;;  %256 = vadd.xlane.f32.xlu1 %v203_v50  ;;  %226 = vadd.xlane.f32.xlu0 %v188_v54 }
  0xab   :  { %v1758_v13 = vsub.f32 %v1568_v15, %v141_v57  ;;  %v70_v60 = vpop.xlane.xlu0 %69 }
  0xac   :  { %v72_v61 = vpop.xlane.xlu1 %71  ;;  %v126_v62 = vmul.f32 0.0078125, %v70_v60  ;;  %v204_v1 = vmul.f32 %v1755_v58, %v1755_v58 }
  0xad   :  { %v127_v2 = vmul.f32 0.0078125, %v72_v61  ;;  %v205_v3 = vmul.f32 %v1758_v13, %v1758_v13 }
  0xae   :  { %v1765_v14 = vsub.f32 %v1575_v16, %v126_v62  ;;  %228 = vadd.xlane.f32.xlu1 %v189_v59  ;;  %258 = vadd.xlane.f32.xlu0 %v204_v1  ;;  %v1379_v16 = vld [vmem:[%s2127_s3 + $0x8] sm:$0xff]  }
  0xaf   :  { %v1768_v15 = vsub.f32 %v1580_v17, %v127_v2  ;;  %v102_v4 = vpop.xlane.xlu0 %101  ;;  %1318 = vmatprep.subr.bf16.mxu0 %v1379_v16  ;;  %1360 = vmatprep.subr.bf16.mxu1 %v1379_v16 }
  0xb0   :  { %v104_v5 = vpop.xlane.xlu1 %103  ;;  %v142_v32 = vmul.f32 0.0078125, %v102_v4  ;;  %v190_v7 = vmul.f32 %v1765_v14, %v1765_v14  ;;  %1319 = vmatpush3.bf16.xpose.msra.mxu0 %v1379_v16  ;;  %1368 = vmatpush3.bf16.xpose.msra.mxu1 %v1379_v16 }
  0xb1   :  { %v143_v34 = vmul.f32 0.0078125, %v104_v5  ;;  %v191_v36 = vmul.f32 %v1768_v15, %v1768_v15 }
  0xb2   :  { %v1778_v35 = vsub.f32 %v1587_v18, %v142_v32  ;;  %260 = vadd.xlane.f32.xlu1 %v205_v3  ;;  %230 = vadd.xlane.f32.xlu0 %v190_v7 }
  0xb3   :  { %v1781_v17 = vsub.f32 %v1592_v19, %v143_v34  ;;  %v74_v37 = vpop.xlane.xlu0 %73 }
  0xb4   :  { %v76_v38 = vpop.xlane.xlu1 %75  ;;  %v128_v42 = vmul.f32 0.0078125, %v74_v37  ;;  %v206_v43 = vmul.f32 %v1778_v35, %v1778_v35 }
  0xb5   :  { %v129_v44 = vmul.f32 0.0078125, %v76_v38  ;;  %v207_v45 = vmul.f32 %v1781_v17, %v1781_v17 }
  0xb6   :  { %v1788_v18 = vsub.f32 %v1599_v20, %v128_v42  ;;  %232 = vadd.xlane.f32.xlu1 %v191_v36  ;;  %262 = vadd.xlane.f32.xlu0 %v206_v43  ;;  %v1380_v20 = vld [vmem:[%s2127_s3] sm:$0xff]  }
  0xb7   :  { %v1791_v19 = vsub.f32 %v1604_v21, %v129_v44  ;;  %v106_v46 = vpop.xlane.xlu0 %105  ;;  %1320 = vmatprep.subr.bf16.mxu0 %v1380_v20  ;;  %1361 = vmatprep.subr.bf16.mxu1 %v1380_v20 }
  0xb8   :  { %v108_v48 = vpop.xlane.xlu1 %107  ;;  %v144_v50 = vmul.f32 0.0078125, %v106_v46  ;;  %v192_v51 = vmul.f32 %v1788_v18, %v1788_v18  ;;  %1321 = vmatpush3.bf16.xpose.msra.mxu0 %v1380_v20  ;;  %1369 = vmatpush3.bf16.xpose.msra.mxu1 %v1380_v20  ;;  %v728_v20 = vld [vmem:[%s2128_s4 + $0x18] sm:$0xff] }
  0xb9   :  { %v145_v52 = vmul.f32 0.0078125, %v108_v48  ;;  %v193_v54 = vmul.f32 %v1791_v19, %v1791_v19 }
  0xba   :  { %v1801_v53 = vsub.f32 %v1611_v22, %v144_v50  ;;  %264 = vadd.xlane.f32.xlu1 %v207_v45  ;;  %234 = vadd.xlane.f32.xlu0 %v192_v51  ;;  %v727_v51 = vld [vmem:[%s2128_s4 + $0x10] sm:$0xff] }
  0xbb   :  { %v1804_v21 = vsub.f32 %v1616_v23, %v145_v52  ;;  %v78_v57 = vpop.xlane.xlu0 %77  ;;  %v734_v52 = vld [vmem:[%s2128_s4 + $0x48] sm:$0xff] }
  0xbc   :  { %v80_v12 = vpop.xlane.xlu1 %79  ;;  %v130_v59 = vmul.f32 0.0078125, %v78_v57  ;;  %v208_v60 = vmul.f32 %v1801_v53, %v1801_v53  ;;  %v729_v57 = vld [vmem:[%s2128_s4 + $0x20] sm:$0xff] }
  0xbd   :  { %v131_v61 = vmul.f32 0.0078125, %v80_v12  ;;  %v209_v62 = vmul.f32 %v1804_v21, %v1804_v21  ;;  %v738_v12 = vld [vmem:[%s2128_s4 + $0x68] sm:$0xff] }
  0xbe   :  { %v1811_v22 = vsub.f32 %v1623_v24, %v130_v59  ;;  %236 = vadd.xlane.f32.xlu1 %v193_v54  ;;  %266 = vadd.xlane.f32.xlu0 %v208_v60  ;;  %v736_v54 = vld [vmem:[%s2128_s4 + $0x58] sm:$0xff]  ;;  %v730_v59 = vld [vmem:[%s2128_s4 + $0x28] sm:$0xff] }
  0xbf   :  { %v1814_v23 = vsub.f32 %v1628_v25, %v131_v61  ;;  %v110_v1 = vpop.xlane.xlu0 %109  ;;  %v740_v60 = vld [vmem:[%s2128_s4 + $0x78] sm:$0xff]  ;;  %v731_v61 = vld [vmem:[%s2128_s4 + $0x30] sm:$0xff] }
  0xc0   :  { %v112_v2 = vpop.xlane.xlu1 %111  ;;  %v146_v3 = vmul.f32 0.0078125, %v110_v1  ;;  %v194_v4 = vmul.f32 %v1811_v22, %v1811_v22  ;;  %v732_v1 = vld [vmem:[%s2128_s4 + $0x38] sm:$0xff] }
  0xc1   :  { %v147_v5 = vmul.f32 0.0078125, %v112_v2  ;;  %v195_v25 = vmul.f32 %v1814_v23, %v1814_v23  ;;  %v744_v2 = vld [vmem:[%s2128_s4 + $0x98] sm:$0xff] }
  0xc2   :  { %v1821_v32 = vsub.f32 %v1635_v26, %v146_v3  ;;  %268 = vadd.xlane.f32.xlu1 %v209_v62  ;;  %238 = vadd.xlane.f32.xlu0 %v194_v4  ;;  %v742_v62 = vld [vmem:[%s2128_s4 + $0x88] sm:$0xff]  ;;  %v733_v3 = vld [vmem:[%s2128_s4 + $0x40] sm:$0xff] }
  0xc3   :  { %v1824_v24 = vsub.f32 %v1640_v27, %v147_v5  ;;  %v82_v7 = vpop.xlane.xlu0 %81  ;;  %v746_v4 = vld [vmem:[%s2128_s4 + $0xa8] sm:$0xff]  ;;  %v735_v5 = vld [vmem:[%s2128_s4 + $0x50] sm:$0xff] }
  0xc4   :  { %v84_v34 = vpop.xlane.xlu1 %83  ;;  %v132_v16 = vmul.f32 0.0078125, %v82_v7  ;;  %v210_v36 = vmul.f32 %v1821_v32, %v1821_v32  ;;  %v737_v7 = vld [vmem:[%s2128_s4 + $0x60] sm:$0xff] }
  0xc5   :  { %v133_v37 = vmul.f32 0.0078125, %v84_v34  ;;  %v211_v27 = vmul.f32 %v1824_v24, %v1824_v24  ;;  %v750_v34 = vld [vmem:[%s2128_s4 + $0xc8] sm:$0xff] }
  0xc6   :  { %v1831_v38 = vsub.f32 %v1647_v28, %v132_v16  ;;  %240 = vadd.xlane.f32.xlu1 %v195_v25  ;;  %270 = vadd.xlane.f32.xlu0 %v210_v36  ;;  %v748_v25 = vld [vmem:[%s2128_s4 + $0xb8] sm:$0xff]  ;;  %v739_v16 = vld [vmem:[%s2128_s4 + $0x70] sm:$0xff] }
  0xc7   :  { %v1834_v26 = vsub.f32 %v1652_v29, %v133_v37  ;;  %v114_v8 = vpop.xlane.xlu0 %113  ;;  %v752_v36 = vld [vmem:[%s2128_s4 + $0xd8] sm:$0xff]  ;;  %v741_v37 = vld [vmem:[%s2128_s4 + $0x80] sm:$0xff] }
  0xc8   :  { %v116_v42 = vpop.xlane.xlu1 %115  ;;  %v148_v43 = vmul.f32 0.0078125, %v114_v8  ;;  %v196_v44 = vmul.f32 %v1831_v38, %v1831_v38  ;;  %v743_v8 = vld [vmem:[%s2128_s4 + $0x90] sm:$0xff] }
  0xc9   :  { %v149_v45 = vmul.f32 0.0078125, %v116_v42  ;;  %v197_v29 = vmul.f32 %v1834_v26, %v1834_v26  ;;  %v756_v42 = vld [vmem:[%s2128_s4 + $0xf8] sm:$0xff] }
  0xca   :  { %v1841_v46 = vsub.f32 %v1659_v30, %v148_v43  ;;  %272 = vadd.xlane.f32.xlu1 %v211_v27  ;;  %242 = vadd.xlane.f32.xlu0 %v196_v44  ;;  %v726_v30 = vld [vmem:[%s2128_s4 + $0x8] sm:$0xff]  ;;  %v745_v43 = vld [vmem:[%s2128_s4 + $0xa0] sm:$0xff]  ;;  %v747_v44 = vld [vmem:[%s2128_s4 + $0xb0] sm:$0xff] }
  0xcb   :  { %v1844_v28 = vsub.f32 %v1664_v31, %v149_v45  ;;  %v725_v31 = vld [vmem:[%s2128_s4] sm:$0xff]  ;;  %v754_v27 = vld [vmem:[%s2128_s4 + $0xe8] sm:$0xff] }
  0xcc   :  { %v212_v48 = vmul.f32 %v1841_v46, %v1841_v46 }
  0xcd   :  { %v213_v50 = vmul.f32 %v1844_v28, %v1844_v28 }
  0xce   :  { %244 = vadd.xlane.f32.xlu1 %v197_v29  ;;  %274 = vadd.xlane.f32.xlu0 %v212_v48  ;;  %v749_v48 = vld [vmem:[%s2128_s4 + $0xc0] sm:$0xff] }
  0xd2   :  { %276 = vadd.xlane.f32.xlu1 %v213_v50 }
  0xe3   :  { %764 = vperm.xlu1 %1372, %v726_v30  }
  0xe4   :  { %759 = vperm.xlu0 %1371, %v725_v31  }
  0xe7   :  { %769 = vperm.xlu1 %1372, %v727_v51  }
  0xe8   :  { %804 = vperm.xlu0 %1371, %v734_v52  }
  0xeb   :  { %774 = vperm.xlu1 %1372, %v728_v20   ;;  %v751_v20 = vld [vmem:[%s2128_s4 + $0xd0] sm:$0xff] }
  0xec   :  { %814 = vperm.xlu0 %1371, %v736_v54  }
  0xef   :  { %779 = vperm.xlu1 %1372, %v729_v57  }
  0xf0   :  { %824 = vperm.xlu0 %1371, %v738_v12  }
  0xf3   :  { %784 = vperm.xlu1 %1372, %v730_v59  }
  0xf4   :  { %834 = vperm.xlu0 %1371, %v740_v60  }
  0xf7   :  { %789 = vperm.xlu1 %1372, %v731_v61  }
  0xf8   :  { %844 = vperm.xlu0 %1371, %v742_v62   ;;  %v753_v62 = vld [vmem:[%s2128_s4 + $0xe0] sm:$0xff] }
  0xfb   :  { %794 = vperm.xlu1 %1372, %v732_v1  }
  0xfc   :  { %854 = vperm.xlu0 %1371, %v744_v2  }
  0xff   :  { %799 = vperm.xlu1 %1372, %v733_v3  }
 0x100   :  { %864 = vperm.xlu0 %1371, %v746_v4  }
 0x103   :  { %809 = vperm.xlu1 %1372, %v735_v5  }
 0x104   :  { %874 = vperm.xlu0 %1371, %v748_v25  }
 0x107   :  { %819 = vperm.xlu1 %1372, %v737_v7   ;;  %v755_v7 = vld [vmem:[%s2128_s4 + $0xf0] sm:$0xff] }
 0x108   :  { %884 = vperm.xlu0 %1371, %v750_v34  }
 0x10b   :  { %829 = vperm.xlu1 %1372, %v739_v16  }
 0x10c   :  { %894 = vperm.xlu0 %1371, %v752_v36  }
 0x10f   :  { %839 = vperm.xlu1 %1372, %v741_v37  }
 0x110   :  { %904 = vperm.xlu0 %1371, %v754_v27  }
 0x113   :  { %849 = vperm.xlu1 %1372, %v743_v8  }
 0x114   :  { %914 = vperm.xlu0 %1371, %v756_v42  }
 0x117   :  { %859 = vperm.xlu1 %1372, %v745_v43  }
 0x11b   :  { %v215_v45 = vpop.xlane.xlu0 %214  ;;  %869 = vperm.xlu1 %1372, %v747_v44  }
 0x11c   :  { %v278_v29 = vmul.f32 0.0078125, %v215_v45 }
 0x11e   :  { %v310_v50 = vadd.f32 1e-05, %v278_v29  ;;  %v1952_v29 = vld [vmem:[%s2129_s1] ss:$0 sm:$0xff] }
 0x11f   :  { %v217_v30 = vpop.xlane.xlu1 %216  ;;  %v247_v31 = vpop.xlane.xlu0 %246  ;;  %879 = vperm.xlu1 %1372, %v749_v48  }
 0x120   :  { %1381 = vrsqrt.f32 %v310_v50  ;;  %v279_v51 = vmul.f32 0.0078125, %v217_v30  ;;  %v294_v52 = vmul.f32 0.0078125, %v247_v31 }
 0x122   :  { %v311_v54 = vadd.f32 1e-05, %v279_v51  ;;  %v326_v57 = vadd.f32 1e-05, %v294_v52 }
 0x123   :  { %v249_v12 = vpop.xlane.xlu1 %248  ;;  %v219_v59 = vpop.xlane.xlu0 %218  ;;  %889 = vperm.xlu1 %1372, %v751_v20  }
 0x124   :  { %1383 = vrsqrt.f32 %v311_v54  ;;  %v295_v60 = vmul.f32 0.0078125, %v249_v12  ;;  %v280_v61 = vmul.f32 0.0078125, %v219_v59 }
 0x125   :  { %1385 = vrsqrt.f32 %v326_v57 }
 0x126   :  { %v327_v1 = vadd.f32 1e-05, %v295_v60  ;;  %v312_v2 = vadd.f32 1e-05, %v280_v61 }
 0x127   :  { %v221_v3 = vpop.xlane.xlu1 %220  ;;  %v251_v4 = vpop.xlane.xlu0 %250  ;;  %899 = vperm.xlu1 %1372, %v753_v62  }
 0x128   :  { %1387 = vrsqrt.f32 %v327_v1  ;;  %v281_v5 = vmul.f32 0.0078125, %v221_v3  ;;  %v296_v25 = vmul.f32 0.0078125, %v251_v4 }
 0x129   :  { %1389 = vrsqrt.f32 %v312_v2 }
 0x12a   :  { %v313_v34 = vadd.f32 1e-05, %v281_v5  ;;  %v328_v16 = vadd.f32 1e-05, %v296_v25 }
 0x12b   :  { %v253_v36 = vpop.xlane.xlu1 %252  ;;  %v223_v37 = vpop.xlane.xlu0 %222  ;;  %909 = vperm.xlu1 %1372, %v755_v7  }
 0x12c   :  { %1391 = vrsqrt.f32 %v313_v34  ;;  %v297_v27 = vmul.f32 0.0078125, %v253_v36  ;;  %v282_v8 = vmul.f32 0.0078125, %v223_v37 }
 0x12d   :  { %v1382_v42 = vpop.eup %1381  ;;  %1393 = vrsqrt.f32 %v328_v16 }
 0x12e   :  { %v329_v43 = vadd.f32 1e-05, %v297_v27  ;;  %v314_v44 = vadd.f32 1e-05, %v282_v8  ;;  %v374_v45 = vmul.f32 %v1382_v42, %v1681_v40  ;;  %v1959_v40 = vld [vmem:[%s2130_s2] ss:$0 sm:$0xff] }
 0x12f   :  { %v225_v48 = vpop.xlane.xlu1 %224  ;;  %v255_v50 = vpop.xlane.xlu0 %254 }
 0x130   :  { %1395 = vrsqrt.f32 %v329_v43  ;;  %v283_v30 = vmul.f32 0.0078125, %v225_v48  ;;  %v298_v31 = vmul.f32 0.0078125, %v255_v50  ;;  %v413_v52 = vmul.f32 %v1952_v29, %v374_v45 }
 0x131   :  { %v1384_v51 = vpop.eup %1383  ;;  %1397 = vrsqrt.f32 %v314_v44 }
 0x132   :  { %v1386_v20 = vpop.eup %1385  ;;  %v315_v54 = vadd.f32 1e-05, %v283_v30  ;;  %v330_v57 = vadd.f32 1e-05, %v298_v31  ;;  %v375_v12 = vmul.f32 %v1384_v51, %v1689_v47  ;;  %v452_v4 = vadd.f32 %v1959_v40, %v413_v52 }
 0x133   :  { %v257_v59 = vpop.xlane.xlu1 %256  ;;  %v227_v60 = vpop.xlane.xlu0 %226  ;;  %v390_v61 = vmul.f32 %v1386_v20, %v1684_v41 }
 0x134   :  { %1399 = vrsqrt.f32 %v315_v54  ;;  %v299_v62 = vmul.f32 0.0078125, %v257_v59  ;;  %v284_v1 = vmul.f32 0.0078125, %v227_v60  ;;  %v414_v2 = vmul.f32 %v1952_v29, %v375_v12 }
 0x135   :  { %v1388_v3 = vpop.eup %1387  ;;  %1401 = vrsqrt.f32 %v330_v57  ;;  %v429_v41 = vmul.f32 %v1952_v29, %v390_v61 }
 0x136   :  { %v1390_v5 = vpop.eup %1389  ;;  %v331_v47 = vadd.f32 1e-05, %v299_v62  ;;  %v316_v25 = vadd.f32 1e-05, %v284_v1  ;;  %v453_v7 = vadd.f32 %v1959_v40, %v414_v2  ;;  %v391_v34 = vmul.f32 %v1388_v3, %v1694_v49 }
 0x137   :  { %v229_v16 = vpop.xlane.xlu1 %228  ;;  %v259_v36 = vpop.xlane.xlu0 %258  ;;  %v376_v37 = vmul.f32 %v1390_v5, %v1699_v55  ;;  %v468_v55 = vadd.f32 %v1959_v40, %v429_v41 }
 0x138   :  { %1403 = vrsqrt.f32 %v331_v47  ;;  %v285_v27 = vmul.f32 0.0078125, %v229_v16  ;;  %v300_v8 = vmul.f32 0.0078125, %v259_v36  ;;  %v484_v42 = vpack.c.bf16 %v453_v7, %v452_v4 }
 0x139   :  { %v1392_v43 = vpop.eup %1391  ;;  %1405 = vrsqrt.f32 %v316_v25  ;;  %v430_v44 = vmul.f32 %v1952_v29, %v391_v34  ;;  %v415_v45 = vmul.f32 %v1952_v29, %v376_v37 }
 0x13a   :  { %v1394_v48 = vpop.eup %1393  ;;  %v317_v50 = vadd.f32 1e-05, %v285_v27  ;;  %v332_v30 = vadd.f32 1e-05, %v300_v8  ;;  %1322 = vmatprep.mubr.bf16.mxu0 %v484_v42  ;;  %v377_v49 = vmul.f32 %v1392_v43, %v1702_v56 }
 0x13b   :  { %v261_v31 = vpop.xlane.xlu1 %260  ;;  %v231_v51 = vpop.xlane.xlu0 %230  ;;  %v469_v52 = vadd.f32 %v1959_v40, %v430_v44  ;;  %v392_v20 = vmul.f32 %v1394_v48, %v1709_v63  ;;  %v454_v61 = vadd.f32 %v1959_v40, %v415_v45 }
 0x13c   :  { %1407 = vrsqrt.f32 %v317_v50  ;;  %v301_v54 = vmul.f32 0.0078125, %v261_v31  ;;  %v286_v57 = vmul.f32 0.0078125, %v231_v51  ;;  %v416_v12 = vmul.f32 %v1952_v29, %v377_v49 }
 0x13d   :  { %v1396_v59 = vpop.eup %1395  ;;  %1409 = vrsqrt.f32 %v332_v30  ;;  %v492_v60 = vpack.c.bf16 %v469_v52, %v468_v55  ;;  %v431_v5 = vmul.f32 %v1952_v29, %v392_v20 }
 0x13e   :  { %v1398_v62 = vpop.eup %1397  ;;  %v333_v56 = vadd.f32 1e-05, %v301_v54  ;;  %v318_v1 = vadd.f32 1e-05, %v286_v57  ;;  %v455_v2 = vadd.f32 %v1959_v40, %v416_v12  ;;  %v393_v3 = vmul.f32 %v1396_v59, %v1712_v0 }
 0x13f   :  { %1338 = vmatprep.mubr.bf16.mxu1 %v492_v60  ;;  %v233_v4 = vpop.xlane.xlu1 %232  ;;  %v263_v63 = vpop.xlane.xlu0 %262  ;;  %v378_v47 = vmul.f32 %v1398_v62, %v1719_v33  ;;  %v470_v33 = vadd.f32 %v1959_v40, %v431_v5 }
 0x140   :  { %1411 = vrsqrt.f32 %v333_v56  ;;  %v287_v25 = vmul.f32 0.0078125, %v233_v4  ;;  %v302_v7 = vmul.f32 0.0078125, %v263_v63  ;;  %v485_v34 = vpack.c.bf16 %v455_v2, %v454_v61 }
 0x141   :  { %v1400_v16 = vpop.eup %1399  ;;  %1413 = vrsqrt.f32 %v318_v1  ;;  %v432_v36 = vmul.f32 %v1952_v29, %v393_v3  ;;  %v417_v41 = vmul.f32 %v1952_v29, %v378_v47 }
 0x142   :  { %v1402_v37 = vpop.eup %1401  ;;  %v319_v27 = vadd.f32 1e-05, %v287_v25  ;;  %v334_v0 = vadd.f32 1e-05, %v302_v7  ;;  %1323 = vmatmul.mubr.bf16.vlgmr.msra.gmra.mxu0 %v485_v34  ;;  %v379_v8 = vmul.f32 %v1400_v16, %v1722_v6 }
 0x143   :  { %v265_v42 = vpop.xlane.xlu1 %264  ;;  %v235_v43 = vpop.xlane.xlu0 %234  ;;  %v471_v44 = vadd.f32 %v1959_v40, %v432_v36  ;;  %v394_v45 = vmul.f32 %v1402_v37, %v1732_v39  ;;  %v456_v51 = vadd.f32 %v1959_v40, %v417_v41 }
 0x144   :  { %1415 = vrsqrt.f32 %v319_v27  ;;  %v303_v48 = vmul.f32 0.0078125, %v265_v42  ;;  %v288_v50 = vmul.f32 0.0078125, %v235_v43  ;;  %v418_v30 = vmul.f32 %v1952_v29, %v379_v8 }
 0x145   :  { %v1404_v49 = vpop.eup %1403  ;;  %1417 = vrsqrt.f32 %v334_v0  ;;  %v493_v31 = vpack.c.bf16 %v471_v44, %v470_v33  ;;  %v433_v12 = vmul.f32 %v1952_v29, %v394_v45 }
 0x146   :  { %v1406_v55 = vpop.eup %1405  ;;  %v335_v6 = vadd.f32 1e-05, %v303_v48  ;;  %v320_v52 = vadd.f32 1e-05, %v288_v50  ;;  %v457_v20 = vadd.f32 %v1959_v40, %v418_v30  ;;  %v395_v54 = vmul.f32 %v1404_v49, %v1735_v9 }
 0x147   :  { %1339 = vmatmul.mubr.bf16.vlgmr.msra.gmra.mxu1 %v493_v31  ;;  %v237_v57 = vpop.xlane.xlu1 %236  ;;  %v267_v39 = vpop.xlane.xlu0 %266  ;;  %v380_v59 = vmul.f32 %v1406_v55, %v1742_v10  ;;  %v472_v10 = vadd.f32 %v1959_v40, %v433_v12 }
 0x148   :  { %1419 = vrsqrt.f32 %v335_v6  ;;  %v289_v60 = vmul.f32 0.0078125, %v237_v57  ;;  %v304_v61 = vmul.f32 0.0078125, %v267_v39  ;;  %v486_v62 = vpack.c.bf16 %v457_v20, %v456_v51 }
 0x149   :  { %v1408_v56 = vpop.eup %1407  ;;  %1421 = vrsqrt.f32 %v320_v52  ;;  %v434_v1 = vmul.f32 %v1952_v29, %v395_v54  ;;  %v419_v2 = vmul.f32 %v1952_v29, %v380_v59 }
 0x14a   :  { %v1410_v3 = vpop.eup %1409  ;;  %v321_v4 = vadd.f32 1e-05, %v289_v60  ;;  %v336_v9 = vadd.f32 1e-05, %v304_v61  ;;  %1326 = vmatprep.mubr.bf16.mxu0 %v486_v62  ;;  %v381_v63 = vmul.f32 %v1408_v56, %v1745_v11 }
 0x14b   :  { %v269_v5 = vpop.xlane.xlu1 %268  ;;  %v239_v47 = vpop.xlane.xlu0 %238  ;;  %v473_v25 = vadd.f32 %v1959_v40, %v434_v1  ;;  %v396_v7 = vmul.f32 %v1410_v3, %v1755_v58  ;;  %v458_v27 = vadd.f32 %v1959_v40, %v419_v2 }
 0x14c   :  { %1423 = vrsqrt.f32 %v321_v4  ;;  %v305_v34 = vmul.f32 0.0078125, %v269_v5  ;;  %v290_v16 = vmul.f32 0.0078125, %v239_v47  ;;  %v420_v36 = vmul.f32 %v1952_v29, %v381_v63 }
 0x14d   :  { %v1412_v41 = vpop.eup %1411  ;;  %1425 = vrsqrt.f32 %v336_v9  ;;  %v494_v37 = vpack.c.bf16 %v473_v25, %v472_v10  ;;  %v435_v44 = vmul.f32 %v1952_v29, %v396_v7 }
 0x14e   :  { %v1414_v0 = vpop.eup %1413  ;;  %v337_v11 = vadd.f32 1e-05, %v305_v34  ;;  %v322_v8 = vadd.f32 1e-05, %v290_v16  ;;  %v459_v42 = vadd.f32 %v1959_v40, %v420_v36  ;;  %v397_v43 = vmul.f32 %v1412_v41, %v1758_v13 }
 0x14f   :  { %1342 = vmatprep.mubr.bf16.mxu1 %v494_v37  ;;  %v241_v33 = vpop.xlane.xlu1 %240  ;;  %v271_v58 = vpop.xlane.xlu0 %270  ;;  %v382_v45 = vmul.f32 %v1414_v0, %v1765_v14  ;;  %v474_v14 = vadd.f32 %v1959_v40, %v435_v44 }
 0x150   :  { %1427 = vrsqrt.f32 %v337_v11  ;;  %v291_v48 = vmul.f32 0.0078125, %v241_v33  ;;  %v306_v50 = vmul.f32 0.0078125, %v271_v58  ;;  %v487_v30 = vpack.c.bf16 %v459_v42, %v458_v27 }
 0x151   :  { %v1416_v49 = vpop.eup %1415  ;;  %1429 = vrsqrt.f32 %v322_v8  ;;  %v436_v31 = vmul.f32 %v1952_v29, %v397_v43  ;;  %v421_v51 = vmul.f32 %v1952_v29, %v382_v45 }
 0x152   :  { %v1418_v55 = vpop.eup %1417  ;;  %v323_v6 = vadd.f32 1e-05, %v291_v48  ;;  %v338_v13 = vadd.f32 1e-05, %v306_v50  ;;  %1327 = vmatmul.mubr.bf16.gmra.mxu0 %v487_v30  ;;  %v383_v52 = vmul.f32 %v1416_v49, %v1768_v15 }
 0x153   :  { %v273_v20 = vpop.xlane.xlu1 %272  ;;  %v243_v54 = vpop.xlane.xlu0 %242  ;;  %v475_v57 = vadd.f32 %v1959_v40, %v436_v31  ;;  %v398_v39 = vmul.f32 %v1418_v55, %v1778_v35  ;;  %v460_v56 = vadd.f32 %v1959_v40, %v421_v51 }
 0x154   :  { %1431 = vrsqrt.f32 %v323_v6  ;;  %v307_v12 = vmul.f32 0.0078125, %v273_v20  ;;  %v292_v59 = vmul.f32 0.0078125, %v243_v54  ;;  %v422_v60 = vmul.f32 %v1952_v29, %v383_v52 }
 0x155   :  { %v1420_v61 = vpop.eup %1419  ;;  %1433 = vrsqrt.f32 %v338_v13  ;;  %v495_v62 = vpack.c.bf16 %v475_v57, %v474_v14  ;;  %v437_v63 = vmul.f32 %v1952_v29, %v398_v39 }
 0x156   :  { %v1422_v1 = vpop.eup %1421  ;;  %v339_v15 = vadd.f32 1e-05, %v307_v12  ;;  %v324_v2 = vadd.f32 1e-05, %v292_v59  ;;  %v461_v3 = vadd.f32 %v1959_v40, %v422_v60  ;;  %v399_v4 = vmul.f32 %v1420_v61, %v1781_v17 }
 0x157   :  { %1343 = vmatmul.mubr.bf16.gmra.mxu1 %v495_v62  ;;  %v245_v9 = vpop.xlane.xlu1 %244  ;;  %v275_v35 = vpop.xlane.xlu0 %274  ;;  %v384_v5 = vmul.f32 %v1422_v1, %v1788_v18  ;;  %v476_v0 = vadd.f32 %v1959_v40, %v437_v63 }
 0x158   :  { %1435 = vrsqrt.f32 %v339_v15  ;;  %v293_v47 = vmul.f32 0.0078125, %v245_v9  ;;  %v308_v10 = vmul.f32 0.0078125, %v275_v35  ;;  %v488_v25 = vpack.c.bf16 %v461_v3, %v460_v56 }
 0x159   :  { %v1424_v7 = vpop.eup %1423  ;;  %1437 = vrsqrt.f32 %v324_v2  ;;  %v438_v34 = vmul.f32 %v1952_v29, %v399_v4  ;;  %v423_v16 = vmul.f32 %v1952_v29, %v384_v5 }
 0x15a   :  { %v1426_v36 = vpop.eup %1425  ;;  %v325_v41 = vadd.f32 1e-05, %v293_v47  ;;  %v340_v17 = vadd.f32 1e-05, %v308_v10  ;;  %1330 = vmatprep.mubr.bf16.mxu0 %v488_v25  ;;  %v385_v37 = vmul.f32 %v1424_v7, %v1791_v19 }
 0x15b   :  { %v277_v27 = vpop.xlane.xlu1 %276  ;;  %v477_v18 = vadd.f32 %v1959_v40, %v438_v34  ;;  %v400_v11 = vmul.f32 %v1426_v36, %v1801_v53  ;;  %v462_v58 = vadd.f32 %v1959_v40, %v423_v16 }
 0x15c   :  { %1439 = vrsqrt.f32 %v325_v41  ;;  %v309_v8 = vmul.f32 0.0078125, %v277_v27  ;;  %v424_v42 = vmul.f32 %v1952_v29, %v385_v37 }
 0x15d   :  { %v1428_v43 = vpop.eup %1427  ;;  %1441 = vrsqrt.f32 %v340_v17  ;;  %v496_v33 = vpack.c.bf16 %v477_v18, %v476_v0  ;;  %v439_v50 = vmul.f32 %v1952_v29, %v400_v11 }
 0x15e   :  { %v1430_v44 = vpop.eup %1429  ;;  %v341_v45 = vadd.f32 1e-05, %v309_v8  ;;  %v463_v19 = vadd.f32 %v1959_v40, %v424_v42  ;;  %v401_v48 = vmul.f32 %v1428_v43, %v1804_v21 }
 0x15f   :  { %1346 = vmatprep.mubr.bf16.mxu1 %v496_v33  ;;  %v386_v53 = vmul.f32 %v1430_v44, %v1811_v22  ;;  %v478_v55 = vadd.f32 %v1959_v40, %v439_v50  ;;  %v765_v7 = vpop.permute.xlu1 %764  ;;  %v760_v37 = vpop.permute.xlu0 %759 }
 0x160   :  { %1443 = vrsqrt.f32 %v341_v45  ;;  %v489_v30 = vpack.c.bf16 %v463_v19, %v462_v58  ;;  %v440_v49 = vmul.f32 %v1952_v29, %v401_v48 }
 0x161   :  { %v1432_v31 = vpop.eup %1431  ;;  %v425_v21 = vmul.f32 %v1952_v29, %v386_v53 }
 0x162   :  { %v1434_v51 = vpop.eup %1433  ;;  %1331 = vmatmul.mubr.bf16.gmra.mxu0 %v489_v30  ;;  %v479_v6 = vadd.f32 %v1959_v40, %v440_v49  ;;  %v387_v13 = vmul.f32 %v1432_v31, %v1814_v23 }
 0x163   :  { %v402_v52 = vmul.f32 %v1434_v51, %v1821_v32  ;;  %v464_v57 = vadd.f32 %v1959_v40, %v425_v21  ;;  %v770_v34 = vpop.permute.xlu1 %769  ;;  %v2054_v27 = vpop.permute.xlu0 %804 }
 0x164   :  { %v497_v20 = vpack.c.bf16 %v479_v6, %v478_v55  ;;  %v426_v22 = vmul.f32 %v1952_v29, %v387_v13 }
 0x165   :  { %v1436_v54 = vpop.eup %1435  ;;  %v441_v59 = vmul.f32 %v1952_v29, %v402_v52 }
 0x166   :  { %v1438_v14 = vpop.eup %1437  ;;  %1347 = vmatmul.mubr.bf16.gmra.mxu1 %v497_v20  ;;  %v465_v39 = vadd.f32 %v1959_v40, %v426_v22  ;;  %v403_v12 = vmul.f32 %v1436_v54, %v1824_v24 }
 0x167   :  { %v388_v23 = vmul.f32 %v1438_v14, %v1831_v38  ;;  %v480_v56 = vadd.f32 %v1959_v40, %v441_v59  ;;  %v775_v16 = vpop.permute.xlu1 %774 }
 0x168   :  { %v490_v60 = vpack.c.bf16 %v465_v39, %v464_v57  ;;  %v442_v61 = vmul.f32 %v1952_v29, %v403_v12 }
 0x169   :  { %v1440_v32 = vpop.eup %1439  ;;  %v427_v2 = vmul.f32 %v1952_v29, %v388_v23 }
 0x16a   :  { %v1442_v62 = vpop.eup %1441  ;;  %1334 = vmatprep.mubr.bf16.mxu0 %v490_v60  ;;  %v481_v1 = vadd.f32 %v1959_v40, %v442_v61  ;;  %v389_v15 = vmul.f32 %v1440_v32, %v1834_v26 }
 0x16b   :  { %v404_v24 = vmul.f32 %v1442_v62, %v1841_v46  ;;  %v466_v9 = vadd.f32 %v1959_v40, %v427_v2  ;;  %v780_v36 = vpop.permute.xlu1 %779 }
 0x16c   :  { %v498_v3 = vpack.c.bf16 %v481_v1, %v480_v56  ;;  %v428_v4 = vmul.f32 %v1952_v29, %v389_v15 }
 0x16d   :  { %v1444_v38 = vpop.eup %1443  ;;  %v443_v5 = vmul.f32 %v1952_v29, %v404_v24 }
 0x16e   :  { %1350 = vmatprep.mubr.bf16.mxu1 %v498_v3  ;;  %v467_v35 = vadd.f32 %v1959_v40, %v428_v4  ;;  %v405_v63 = vmul.f32 %v1444_v38, %v1844_v28 }
 0x16f   :  { %v482_v10 = vadd.f32 %v1959_v40, %v443_v5  ;;  %v785_v41 = vpop.permute.xlu1 %784 }
 0x170   :  { %v491_v47 = vpack.c.bf16 %v467_v35, %v466_v9  ;;  %v444_v26 = vmul.f32 %v1952_v29, %v405_v63  ;;  %v2058_v29 = vpop.permute.xlu0 %814 }
 0x172   :  { %1335 = vmatmul.mubr.bf16.gmra.mxu0 %v491_v47  ;;  %v483_v46 = vadd.f32 %v1959_v40, %v444_v26 }
 0x173   :  { %v790_v17 = vpop.permute.xlu1 %789 }
 0x174   :  { %v499_v25 = vpack.c.bf16 %v483_v46, %v482_v10  ;;  %v2062_v11 = vpop.permute.xlu0 %824 }
 0x176   :  { %1351 = vmatmul.mubr.bf16.gmra.mxu1 %v499_v25 }
 0x177   :  { %v795_v28 = vpop.permute.xlu1 %794 }
 0x178   :  { %v2066_v8 = vpop.permute.xlu0 %834 }
 0x17b   :  { %v2056_v0 = vpop.permute.xlu1 %799 }
 0x17c   :  { %v845_v33 = vpop.permute.xlu0 %844 }
 0x17f   :  { %v2060_v18 = vpop.permute.xlu1 %809 }
 0x180   :  { %v855_v55 = vpop.permute.xlu0 %854 }
 0x183   :  { %v2064_v40 = vpop.permute.xlu1 %819 }
 0x184   :  { %v865_v59 = vpop.permute.xlu0 %864 }
 0x187   :  { %v2068_v42 = vpop.permute.xlu1 %829 }
 0x188   :  { %v875_v4 = vpop.permute.xlu0 %874 }
 0x18b   :  { %v840_v44 = vpop.permute.xlu1 %839 }
 0x18f   :  { %v850_v6 = vpop.permute.xlu1 %849 }
 0x193   :  { %v860_v60 = vpop.permute.xlu1 %859 }
 0x197   :  { %v870_v38 = vpop.permute.xlu1 %869 }
 0x202   :  { %v1324_v43 = vpop.f32.mrf.mxu0 }
 0x203   :  { %v919_v19 = vmul.f32 %v1324_v43, %v770_v34  ;;  %v885_v34 = vpop.permute.xlu0 %884 }
 0x204   :  { %v598_v58 = vpop.f32.mrf.mxu0 }
 0x205   :  { %v917_v30 = vmul.f32 %v760_v37, %v598_v58 }
 0x206   :  { %v1325_v45 = vpop.f32.mrf.mxu0 }
 0x207   :  { %v920_v48 = vmul.f32 %v1325_v45, %v775_v16  ;;  %v1340_v50 = vpop.f32.mrf.mxu1  ;;  %v880_v16 = vpop.permute.xlu1 %879 }
 0x208   :  { %v601_v53 = vpop.f32.mrf.mxu0  ;;  %v935_v52 = vmul.f32 %v1340_v50, %v850_v6  ;;  %v895_v58 = vpop.permute.xlu0 %894 }
 0x209   :  { %v1195_v49 = vpack.c.bf16 %v920_v48, %v919_v19  ;;  %v918_v31 = vmul.f32 %v765_v7, %v601_v53  ;;  %v662_v51 = vpop.f32.mrf.mxu1 }
 0x20a   :  { %v933_v54 = vmul.f32 %v840_v44, %v662_v51 }
 0x20b   :  { %1267 = vst [vmem:[%s2131_s5 + $0x8] sm:$0xff] %v1195_v49   ;;  %v1190_v13 = vpack.c.bf16 %v918_v31, %v917_v30  ;;  %v1341_v21 = vpop.f32.mrf.mxu1  ;;  %v890_v48 = vpop.permute.xlu1 %889 }
 0x20c   :  { %v936_v20 = vmul.f32 %v1341_v21, %v855_v55  ;;  %v905_v55 = vpop.permute.xlu0 %904 }
 0x20d   :  { %1191 = vst [vmem:[%s2131_s5] sm:$0xff] %v1190_v13   ;;  %v665_v22 = vpop.f32.mrf.mxu1 }
 0x20e   :  { %v1235_v14 = vpack.c.bf16 %v936_v20, %v935_v52  ;;  %v934_v57 = vmul.f32 %v845_v33, %v665_v22 }
 0x20f   :  { %v900_v6 = vpop.permute.xlu1 %899 }
 0x210   :  { %1275 = vst [vmem:[%s2131_s5 + $0x48] sm:$0xff] %v1235_v14   ;;  %v1230_v39 = vpack.c.bf16 %v934_v57, %v933_v54  ;;  %v915_v57 = vpop.permute.xlu0 %914 }
 0x212   :  { %1274 = vst [vmem:[%s2131_s5 + $0x40] sm:$0xff] %v1230_v39   ;;  %v1328_v12 = vpop.f32.mrf.mxu0 }
 0x213   :  { %v923_v32 = vmul.f32 %v1328_v12, %v790_v17 }
 0x214   :  { %v614_v23 = vpop.f32.mrf.mxu0 }
 0x215   :  { %v921_v15 = vmul.f32 %v780_v36, %v614_v23  ;;  %v910_v23 = vpop.permute.xlu1 %909 }
 0x216   :  { %v1329_v61 = vpop.f32.mrf.mxu0 }
 0x217   :  { %v924_v62 = vmul.f32 %v1329_v61, %v795_v28  ;;  %v1344_v56 = vpop.f32.mrf.mxu1 }
 0x218   :  { %v617_v1 = vpop.f32.mrf.mxu0  ;;  %v939_v63 = vmul.f32 %v1344_v56, %v870_v38 }
 0x219   :  { %v1205_v2 = vpack.c.bf16 %v924_v62, %v923_v32  ;;  %v922_v24 = vmul.f32 %v785_v41, %v617_v1  ;;  %v678_v3 = vpop.f32.mrf.mxu1 }
 0x21a   :  { %v937_v26 = vmul.f32 %v860_v60, %v678_v3 }
 0x21b   :  { %1269 = vst [vmem:[%s2131_s5 + $0x18] sm:$0xff] %v1205_v2   ;;  %v1200_v9 = vpack.c.bf16 %v922_v24, %v921_v15  ;;  %v1345_v35 = vpop.f32.mrf.mxu1 }
 0x21c   :  { %v940_v5 = vmul.f32 %v1345_v35, %v875_v4 }
 0x21d   :  { %1268 = vst [vmem:[%s2131_s5 + $0x10] sm:$0xff] %v1200_v9   ;;  %v681_v47 = vpop.f32.mrf.mxu1 }
 0x21e   :  { %v1245_v10 = vpack.c.bf16 %v940_v5, %v939_v63  ;;  %v938_v46 = vmul.f32 %v865_v59, %v681_v47 }
 0x220   :  { %1277 = vst [vmem:[%s2131_s5 + $0x58] sm:$0xff] %v1245_v10   ;;  %v1240_v25 = vpack.c.bf16 %v938_v46, %v937_v26 }
 0x222   :  { %1276 = vst [vmem:[%s2131_s5 + $0x50] sm:$0xff] %v1240_v25   ;;  %v1332_v7 = vpop.f32.mrf.mxu0 }
 0x223   :  { %v927_v37 = vmul.f32 %v1332_v7, %v2060_v18 }
 0x224   :  { %v630_v36 = vpop.f32.mrf.mxu0 }
 0x225   :  { %v925_v44 = vmul.f32 %v2056_v0, %v630_v36 }
 0x226   :  { %v1333_v41 = vpop.f32.mrf.mxu0  ;;  %v1348_v17 = vpop.f32.mrf.mxu1 }
 0x227   :  { %v928_v28 = vmul.f32 %v1333_v41, %v2058_v29  ;;  %v943_v53 = vmul.f32 %v1348_v17, %v890_v48 }
 0x228   :  { %v633_v43 = vpop.f32.mrf.mxu0  ;;  %v694_v33 = vpop.f32.mrf.mxu1 }
 0x229   :  { %v1215_v45 = vpack.c.bf16 %v928_v28, %v927_v37  ;;  %v926_v19 = vmul.f32 %v2054_v27, %v633_v43  ;;  %v941_v29 = vmul.f32 %v880_v16, %v694_v33 }
 0x22a   :  { %v1349_v50 = vpop.f32.mrf.mxu1 }
 0x22b   :  { %1271 = vst [vmem:[%s2131_s5 + $0x28] sm:$0xff] %v1215_v45   ;;  %v1210_v30 = vpack.c.bf16 %v926_v19, %v925_v44  ;;  %v944_v49 = vmul.f32 %v1349_v50, %v895_v58 }
 0x22c   :  { %v697_v18 = vpop.f32.mrf.mxu1 }
 0x22d   :  { %1270 = vst [vmem:[%s2131_s5 + $0x20] sm:$0xff] %v1210_v30   ;;  %v1255_v31 = vpack.c.bf16 %v944_v49, %v943_v53  ;;  %v942_v0 = vmul.f32 %v885_v34, %v697_v18 }
 0x22f   :  { %1279 = vst [vmem:[%s2131_s5 + $0x68] sm:$0xff] %v1255_v31   ;;  %v1250_v27 = vpack.c.bf16 %v942_v0, %v941_v29 }
 0x231   :  { %1278 = vst [vmem:[%s2131_s5 + $0x60] sm:$0xff] %v1250_v27  }
 0x232   :  { %v1336_v51 = vpop.f32.mrf.mxu0 }
 0x233   :  { %v931_v20 = vmul.f32 %v1336_v51, %v2068_v42 }
 0x234   :  { %v646_v13 = vpop.f32.mrf.mxu0 }
 0x235   :  { %v929_v39 = vmul.f32 %v2064_v40, %v646_v13 }
 0x236   :  { %v1337_v21 = vpop.f32.mrf.mxu0  ;;  %v1352_v52 = vpop.f32.mrf.mxu1 }
 0x237   :  { %v932_v22 = vmul.f32 %v1337_v21, %v2066_v8  ;;  %v947_v61 = vmul.f32 %v1352_v52, %v910_v23 }
 0x238   :  { %v649_v54 = vpop.f32.mrf.mxu0  ;;  %v710_v14 = vpop.f32.mrf.mxu1 }
 0x239   :  { %v1225_v12 = vpack.c.bf16 %v932_v22, %v931_v20  ;;  %v930_v59 = vmul.f32 %v2062_v11, %v649_v54  ;;  %v945_v8 = vmul.f32 %v900_v6, %v710_v14 }
 0x23a   :  { %v1353_v60 = vpop.f32.mrf.mxu1 }
 0x23b   :  { %1273 = vst [vmem:[%s2131_s5 + $0x38] sm:$0xff] %v1225_v12   ;;  %v1220_v32 = vpack.c.bf16 %v930_v59, %v929_v39  ;;  %v948_v62 = vmul.f32 %v1353_v60, %v915_v57 }
 0x23c   :  { %v713_v42 = vpop.f32.mrf.mxu1 }
 0x23d   :  { %1272 = vst [vmem:[%s2131_s5 + $0x30] sm:$0xff] %v1220_v32   ;;  %v1265_v56 = vpack.c.bf16 %v948_v62, %v947_v61  ;;  %v946_v40 = vmul.f32 %v905_v55, %v713_v42 }
 0x23f   :  { %1281 = vst [vmem:[%s2131_s5 + $0x78] sm:$0xff] %v1265_v56   ;;  %v1260_v11 = vpack.c.bf16 %v946_v40, %v945_v8 }
 0x241   :  { %1280 = vst [vmem:[%s2131_s5 + $0x70] sm:$0xff] %v1260_v11  }

</bundles_post_ra>
